<compile_context>
chip_gen: v7x
topology: tpu7x:2x2x1
jax: 0.10.0
libtpu: 0.0.40
codegen_flags: <defaults>
</compile_context>

<pallas_src>
import jax
import jax.numpy as jnp
from jax.experimental import pallas as pl
from jax.experimental.pallas import tpu as pltpu

EPS = 1e-5


# --------------------------------- kernel ------------------------------------
def _vt_fused_kernel(x_ref,
                     wa_ref, ba_ref, wv_ref, bv_ref,          # FilterTokenizer
                     dng_ref, dnb_ref,                        # 0-layer decoder LayerNorm
                     wq_ref, bq_ref, wk_ref, bk_ref, wp_ref, bp_ref,   # Projector
                     out_ref, t_ref):
    """Fused VisualTransformer forward for the whole batch (everything in VMEM)."""
    N, HW, C = x_ref.shape
    L = wa_ref.shape[1]
    TC = wv_ref.shape[1]
    Co = wp_ref.shape[1]

    x3 = x_ref[...]                                   # (N, HW, C)
    x2 = x3.reshape(N * HW, C)                        # leading-dim merge (free re-view)

    # ---- FilterTokenizer: A = softmax_HW(X Wa + ba);  T = A^T (X Wv + bv) ----
    a2 = jnp.dot(x2, wa_ref[...], preferred_element_type=jnp.float32) + ba_ref[...]   # (N*HW, L)
    v2 = jnp.dot(x2, wv_ref[...], preferred_element_type=jnp.float32) + bv_ref[...]   # (N*HW, TC)

    t_rows = []
    # Static loop over the (small) batch: the softmax is per-image over HW pixels
    # and T = A^T V is a transposed-lhs contraction, both done as proven 2-D ops.
    # TODO(synk): for large N, promote this to a "parallel"/core_parallel grid axis
    # (v7x megacore) instead of a static in-kernel loop.
    for n in range(N):
        a_n = a2[n * HW:(n + 1) * HW, :]              # (HW, L)
        v_n = v2[n * HW:(n + 1) * HW, :]              # (HW, TC)
        a_n = a_n - jnp.max(a_n, axis=0, keepdims=True)
        e_n = jnp.exp(a_n)
        p_n = e_n / jnp.sum(e_n, axis=0, keepdims=True)            # softmax over pixels
        t_n = jax.lax.dot_general(p_n, v_n, (((0,), (0,)), ((), ())),
                                  preferred_element_type=jnp.float32)  # (L, TC)
        t_ref[n] = t_n
        t_rows.append(t_n)
    t2 = jnp.concatenate(t_rows, axis=0)              # (N*L, TC)

    # ---- nn.Transformer(token_channels, num_decoder_layers=0) ----
    # 0-layer decoder == its final LayerNorm applied to tgt (= t).
    # The encoder ("memory") is dead code for the module outputs and is elided.
    mu = jnp.mean(t2, axis=-1, keepdims=True)
    var = jnp.mean((t2 - mu) ** 2, axis=-1, keepdims=True)
    t_out2 = (t2 - mu) * jax.lax.rsqrt(var + EPS) * dng_ref[...] + dnb_ref[...]  # (N*L, TC)

    # ---- Projector: P = softmax_L((X Wq)(T Wk)^T);  X_out = X + P (T Wv) ----
    q2 = jnp.dot(x2, wq_ref[...], preferred_element_type=jnp.float32) + bq_ref[...]    # (N*HW, TC)
    k2 = jnp.dot(t_out2, wk_ref[...], preferred_element_type=jnp.float32) + bk_ref[...]  # (N*L, TC)
    vp2 = jnp.dot(t_out2, wp_ref[...], preferred_element_type=jnp.float32) + bp_ref[...]  # (N*L, Co)

    q3 = q2.reshape(N, HW, TC)
    k3 = k2.reshape(N, L, TC)
    vp3 = vp2.reshape(N, L, Co)

    # batched (flash-pattern) contractions: batch dim = N
    s = jnp.einsum('npc,nlc->npl', q3, k3, preferred_element_type=jnp.float32)   # (N, HW, L)
    s = s - jnp.max(s, axis=-1, keepdims=True)
    es = jnp.exp(s)
    p = es / jnp.sum(es, axis=-1, keepdims=True)
    o = jnp.einsum('npl,nlc->npc', p, vp3, preferred_element_type=jnp.float32)   # (N, HW, Co)

    out_ref[...] = (x3 + o).astype(out_ref.dtype)


# ------------------------------ pallas_call glue ------------------------------
def _full_spec(shape):
    nd = len(shape)
    return pl.BlockSpec(shape, lambda i, _nd=nd: (0,) * _nd)


def visual_transformer_forward(params, x, cfg):
    """Mirrors VisualTransformer.forward with tokenizer_type='filter',
    is_projected=True, eval mode (dropout off).  Returns (out, t)."""
    N, HW, C = x.shape
    L, TC, Co = cfg["tokens"], cfg["token_channels"], cfg["out_channels"]
    f32 = jnp.float32

    args = (x,
            params["tok_wa"], params["tok_ba"], params["tok_wv"], params["tok_bv"],
            params["dec_norm_g"], params["dec_norm_b"],
            params["proj_wq"], params["proj_bq"],
            params["proj_wk"], params["proj_bk"],
            params["proj_wv"], params["proj_bv"])

    out_shapes = (jax.ShapeDtypeStruct((N, HW, Co), f32),
                  jax.ShapeDtypeStruct((N, L, TC), f32))

    out, t = pl.pallas_call(
        _vt_fused_kernel,
        grid=(1,),                                   # single fused invocation, whole batch
        in_specs=[_full_spec(a.shape) for a in args],
        out_specs=(_full_spec((N, HW, Co)), _full_spec((N, L, TC))),
        out_shape=out_shapes,
        compiler_params=pltpu.CompilerParams(dimension_semantics=("arbitrary",)),
    )(*args)
    return out, t


# ------------------------------ parameters ------------------------------------
def init_params(key, cfg):
    # NOTE: the nn.Transformer encoder-layer weights are intentionally not
    # created — with num_decoder_layers=0 they cannot influence the module's
    # returned (out, t) (the encoder "memory" is discarded by the 0-layer decoder).
    C, Co = cfg["in_channels"], cfg["out_channels"]
    TC, L = cfg["token_channels"], cfg["tokens"]
    D = TC
    f32 = jnp.float32

    def nrm(k, shape):
        return 0.02 * jax.random.normal(k, shape, dtype=f32)

    keys = jax.random.split(key, 8)
    return {
        "tok_wa": nrm(keys[0], (C, L)),   "tok_ba": jnp.zeros((1, L), f32),
        "tok_wv": nrm(keys[1], (C, TC)),  "tok_bv": jnp.zeros((1, TC), f32),
        "dec_norm_g": jnp.ones((1, D), f32), "dec_norm_b": jnp.zeros((1, D), f32),
        "proj_wq": nrm(keys[2], (C, TC)),  "proj_bq": jnp.zeros((1, TC), f32),
        "proj_wk": nrm(keys[3], (TC, TC)), "proj_bk": jnp.zeros((1, TC), f32),
        "proj_wv": nrm(keys[4], (TC, Co)), "proj_bv": jnp.zeros((1, Co), f32),
    }


# ------------------------------ pure-JAX reference -----------------------------
def _ref_ln(x, g, b):
    mu = x.mean(-1, keepdims=True)
    var = ((x - mu) ** 2).mean(-1, keepdims=True)
    return (x - mu) / jnp.sqrt(var + EPS) * g + b


def _ref_forward(params, x):
    a = jax.nn.softmax(x @ params["tok_wa"] + params["tok_ba"], axis=1)
    v = x @ params["tok_wv"] + params["tok_bv"]
    t = jnp.einsum("nhl,nhc->nlc", a, v)
    t_out = _ref_ln(t, params["dec_norm_g"], params["dec_norm_b"])
    q = x @ params["proj_wq"] + params["proj_bq"]
    k = t_out @ params["proj_wk"] + params["proj_bk"]
    a2 = jax.nn.softmax(jnp.einsum("nhc,nlc->nhl", q, k), axis=-1)
    vv = t_out @ params["proj_wv"] + params["proj_bv"]
    out = x + jnp.einsum("nhl,nlc->nhc", a2, vv)
    return out, t


# ----------------------------------- main --------------------------------------
if __name__ == "__main__":
    cfg = dict(
        in_channels=32, out_channels=32, token_channels=32, tokens=8,
        tokenizer_type="filter", attn_dim=32,        # attn_dim unused in forward
        transformer_enc_layers=2, transformer_heads=4,
        transformer_fc_dim=64, transformer_dropout=0.0, is_projected=True,
    )
    N, HW = 2, 64                                    # e.g. an 8x8 feature map

    key = jax.random.PRNGKey(0)
    kx, kp = jax.random.split(key)
    x = jax.random.normal(kx, (N, HW, cfg["in_channels"]), dtype=jnp.float32)
    params = init_params(kp, cfg)

    fwd = jax.jit(lambda p, xx: visual_transformer_forward(p, xx, cfg))
    out, t = fwd(params, x)
    jax.block_until_ready((out, t))

    out_ref, t_ref = _ref_forward(params, x)
    assert out.shape == (N, HW, cfg["out_channels"])
    assert t.shape == (N, cfg["tokens"], cfg["token_channels"])
    assert jnp.allclose(out, out_ref, atol=1e-3, rtol=1e-3)
    assert jnp.allclose(t, t_ref, atol=1e-3, rtol=1e-3)

    print("KERNEL_OK")
</pallas_src>

<mosaic_0001>
module attributes {stable_mosaic.version = 11 : i64} {
  func.func @_vt_fused_kernel(%arg0: i32, %arg1: memref<2x64x32xf32, #tpu.memory_space<vmem>>, %arg2: memref<32x8xf32, #tpu.memory_space<vmem>>, %arg3: memref<1x8xf32, #tpu.memory_space<vmem>>, %arg4: memref<32x32xf32, #tpu.memory_space<vmem>>, %arg5: memref<1x32xf32, #tpu.memory_space<vmem>>, %arg6: memref<1x32xf32, #tpu.memory_space<vmem>>, %arg7: memref<1x32xf32, #tpu.memory_space<vmem>>, %arg8: memref<32x32xf32, #tpu.memory_space<vmem>>, %arg9: memref<1x32xf32, #tpu.memory_space<vmem>>, %arg10: memref<32x32xf32, #tpu.memory_space<vmem>>, %arg11: memref<1x32xf32, #tpu.memory_space<vmem>>, %arg12: memref<32x32xf32, #tpu.memory_space<vmem>>, %arg13: memref<1x32xf32, #tpu.memory_space<vmem>>, %arg14: memref<2x64x32xf32, #tpu.memory_space<vmem>>, %arg15: memref<2x8x32xf32, #tpu.memory_space<vmem>>) attributes {dimension_semantics = [#tpu.dimension_semantics<arbitrary>], iteration_bounds = array<i64: 1>, scalar_prefetch = 0 : i64, scratch_operands = 0 : i64, tpu.core_type = #tpu.core_type<tc>, window_params = [{pipeline_mode = #tpu.pipeline_mode<synchronous>, transform_indices = @transform_0, window_bounds = array<i64: 2, 64, 32>}, {pipeline_mode = #tpu.pipeline_mode<synchronous>, transform_indices = @transform_1, window_bounds = array<i64: 32, 8>}, {pipeline_mode = #tpu.pipeline_mode<synchronous>, transform_indices = @transform_2, window_bounds = array<i64: 1, 8>}, {pipeline_mode = #tpu.pipeline_mode<synchronous>, transform_indices = @transform_3, window_bounds = array<i64: 32, 32>}, {pipeline_mode = #tpu.pipeline_mode<synchronous>, transform_indices = @transform_4, window_bounds = array<i64: 1, 32>}, {pipeline_mode = #tpu.pipeline_mode<synchronous>, transform_indices = @transform_5, window_bounds = array<i64: 1, 32>}, {pipeline_mode = #tpu.pipeline_mode<synchronous>, transform_indices = @transform_6, window_bounds = array<i64: 1, 32>}, {pipeline_mode = #tpu.pipeline_mode<synchronous>, transform_indices = @transform_7, window_bounds = array<i64: 32, 32>}, {pipeline_mode = #tpu.pipeline_mode<synchronous>, transform_indices = @transform_8, window_bounds = array<i64: 1, 32>}, {pipeline_mode = #tpu.pipeline_mode<synchronous>, transform_indices = @transform_9, window_bounds = array<i64: 32, 32>}, {pipeline_mode = #tpu.pipeline_mode<synchronous>, transform_indices = @transform_10, window_bounds = array<i64: 1, 32>}, {pipeline_mode = #tpu.pipeline_mode<synchronous>, transform_indices = @transform_11, window_bounds = array<i64: 32, 32>}, {pipeline_mode = #tpu.pipeline_mode<synchronous>, transform_indices = @transform_12, window_bounds = array<i64: 1, 32>}, {pipeline_mode = #tpu.pipeline_mode<synchronous>, transform_indices = @transform_13, window_bounds = array<i64: 2, 64, 32>}, {pipeline_mode = #tpu.pipeline_mode<synchronous>, transform_indices = @transform_14, window_bounds = array<i64: 2, 8, 32>}]} {
    %c0 = arith.constant 0 : index
    %c0_0 = arith.constant 0 : index
    %c0_1 = arith.constant 0 : index
    %0 = vector.load %arg1[%c0, %c0_0, %c0_1] : memref<2x64x32xf32, #tpu.memory_space<vmem>>, vector<2x64x32xf32>
    %1 = vector.shape_cast %0 : vector<2x64x32xf32> to vector<128x32xf32>
    %c0_2 = arith.constant 0 : index
    %c0_3 = arith.constant 0 : index
    %2 = vector.load %arg2[%c0_2, %c0_3] : memref<32x8xf32, #tpu.memory_space<vmem>>, vector<32x8xf32>
    %cst = arith.constant dense<0.000000e+00> : vector<128x8xf32>
    %3 = tpu.matmul %1, %2, %cst {dimension_numbers = #tpu.dot_dimension_numbers<[1], [0], [0], [1], [0, 0, 1, 1], [], []>} : vector<128x32xf32>, vector<32x8xf32>, vector<128x8xf32> -> vector<128x8xf32>
    %c0_4 = arith.constant 0 : index
    %c0_5 = arith.constant 0 : index
    %4 = vector.load %arg3[%c0_4, %c0_5] : memref<1x8xf32, #tpu.memory_space<vmem>>, vector<1x8xf32>
    %5 = vector.broadcast %4 : vector<1x8xf32> to vector<128x8xf32>
    %6 = arith.addf %3, %5 : vector<128x8xf32>
    %c0_6 = arith.constant 0 : index
    %c0_7 = arith.constant 0 : index
    %7 = vector.load %arg4[%c0_6, %c0_7] : memref<32x32xf32, #tpu.memory_space<vmem>>, vector<32x32xf32>
    %cst_8 = arith.constant dense<0.000000e+00> : vector<128x32xf32>
    %8 = tpu.matmul %1, %7, %cst_8 {dimension_numbers = #tpu.dot_dimension_numbers<[1], [0], [0], [1], [0, 0, 1, 1], [], []>} : vector<128x32xf32>, vector<32x32xf32>, vector<128x32xf32> -> vector<128x32xf32>
    %c0_9 = arith.constant 0 : index
    %c0_10 = arith.constant 0 : index
    %9 = vector.load %arg5[%c0_9, %c0_10] : memref<1x32xf32, #tpu.memory_space<vmem>>, vector<1x32xf32>
    %10 = vector.broadcast %9 : vector<1x32xf32> to vector<128x32xf32>
    %11 = arith.addf %8, %10 : vector<128x32xf32>
    %12 = vector.extract_strided_slice %6 {offsets = [0, 0], sizes = [64, 8], strides = [1, 1]} : vector<128x8xf32> to vector<64x8xf32>
    %13 = vector.extract_strided_slice %11 {offsets = [0, 0], sizes = [64, 32], strides = [1, 1]} : vector<128x32xf32> to vector<64x32xf32>
    %cst_11 = arith.constant dense<0xFF800000> : vector<8xf32>
    %14 = vector.multi_reduction <maximumf>, %12, %cst_11 [0] : vector<64x8xf32> to vector<8xf32>
    %15 = vector.shape_cast %14 : vector<8xf32> to vector<1x8xf32>
    %16 = vector.broadcast %15 : vector<1x8xf32> to vector<64x8xf32>
    %17 = arith.subf %12, %16 : vector<64x8xf32>
    %18 = math.exp %17 : vector<64x8xf32>
    %cst_12 = arith.constant dense<0.000000e+00> : vector<8xf32>
    %19 = vector.multi_reduction <add>, %18, %cst_12 [0] : vector<64x8xf32> to vector<8xf32>
    %20 = vector.shape_cast %19 : vector<8xf32> to vector<1x8xf32>
    %21 = vector.broadcast %20 : vector<1x8xf32> to vector<64x8xf32>
    %22 = arith.divf %18, %21 : vector<64x8xf32>
    %cst_13 = arith.constant dense<0.000000e+00> : vector<8x32xf32>
    %23 = tpu.matmul %22, %13, %cst_13 {dimension_numbers = #tpu.dot_dimension_numbers<[0], [0], [1], [1], [0, 1, 1, 1], [], []>} : vector<64x8xf32>, vector<64x32xf32>, vector<8x32xf32> -> vector<8x32xf32>
    %c0_14 = arith.constant 0 : index
    %c0_15 = arith.constant 0 : index
    %c0_16 = arith.constant 0 : index
    %24 = vector.load %arg15[%c0_14, %c0_15, %c0_16] : memref<2x8x32xf32, #tpu.memory_space<vmem>>, vector<1x8x32xf32>
    %25 = vector.shape_cast %24 : vector<1x8x32xf32> to vector<8x32xf32>
    %26 = vector.shape_cast %23 : vector<8x32xf32> to vector<1x8x32xf32>
    tpu.vector_store %arg15[%c0_14, %c0_15, %c0_16], %26 {strides = array<i32>} : memref<2x8x32xf32, #tpu.memory_space<vmem>>, vector<1x8x32xf32>,
    %27 = vector.extract_strided_slice %6 {offsets = [64, 0], sizes = [64, 8], strides = [1, 1]} : vector<128x8xf32> to vector<64x8xf32>
    %28 = vector.extract_strided_slice %11 {offsets = [64, 0], sizes = [64, 32], strides = [1, 1]} : vector<128x32xf32> to vector<64x32xf32>
    %cst_17 = arith.constant dense<0xFF800000> : vector<8xf32>
    %29 = vector.multi_reduction <maximumf>, %27, %cst_17 [0] : vector<64x8xf32> to vector<8xf32>
    %30 = vector.shape_cast %29 : vector<8xf32> to vector<1x8xf32>
    %31 = vector.broadcast %30 : vector<1x8xf32> to vector<64x8xf32>
    %32 = arith.subf %27, %31 : vector<64x8xf32>
    %33 = math.exp %32 : vector<64x8xf32>
    %cst_18 = arith.constant dense<0.000000e+00> : vector<8xf32>
    %34 = vector.multi_reduction <add>, %33, %cst_18 [0] : vector<64x8xf32> to vector<8xf32>
    %35 = vector.shape_cast %34 : vector<8xf32> to vector<1x8xf32>
    %36 = vector.broadcast %35 : vector<1x8xf32> to vector<64x8xf32>
    %37 = arith.divf %33, %36 : vector<64x8xf32>
    %cst_19 = arith.constant dense<0.000000e+00> : vector<8x32xf32>
    %38 = tpu.matmul %37, %28, %cst_19 {dimension_numbers = #tpu.dot_dimension_numbers<[0], [0], [1], [1], [0, 1, 1, 1], [], []>} : vector<64x8xf32>, vector<64x32xf32>, vector<8x32xf32> -> vector<8x32xf32>
    %c1 = arith.constant 1 : index
    %c0_20 = arith.constant 0 : index
    %c0_21 = arith.constant 0 : index
    %39 = vector.load %arg15[%c1, %c0_20, %c0_21] : memref<2x8x32xf32, #tpu.memory_space<vmem>>, vector<1x8x32xf32>
    %40 = vector.shape_cast %39 : vector<1x8x32xf32> to vector<8x32xf32>
    %41 = vector.shape_cast %38 : vector<8x32xf32> to vector<1x8x32xf32>
    tpu.vector_store %arg15[%c1, %c0_20, %c0_21], %41 {strides = array<i32>} : memref<2x8x32xf32, #tpu.memory_space<vmem>>, vector<1x8x32xf32>,
    %42 = tpu.concatenate %23, %38 in 0 : vector<8x32xf32>, vector<8x32xf32> -> vector<16x32xf32>
    %cst_22 = arith.constant dense<0.000000e+00> : vector<16xf32>
    %43 = vector.multi_reduction <add>, %42, %cst_22 [1] : vector<16x32xf32> to vector<16xf32>
    %44 = vector.shape_cast %43 : vector<16xf32> to vector<16x1xf32>
    %cst_23 = arith.constant 3.200000e+01 : f32
    %45 = vector.broadcast %cst_23 : f32 to vector<16x1xf32>
    %46 = arith.divf %44, %45 : vector<16x1xf32>
    %47 = vector.broadcast %46 : vector<16x1xf32> to vector<16x32xf32>
    %48 = arith.subf %42, %47 : vector<16x32xf32>
    %49 = arith.mulf %48, %48 : vector<16x32xf32>
    %cst_24 = arith.constant dense<0.000000e+00> : vector<16xf32>
    %50 = vector.multi_reduction <add>, %49, %cst_24 [1] : vector<16x32xf32> to vector<16xf32>
    %51 = vector.shape_cast %50 : vector<16xf32> to vector<16x1xf32>
    %cst_25 = arith.constant 3.200000e+01 : f32
    %52 = vector.broadcast %cst_25 : f32 to vector<16x1xf32>
    %53 = arith.divf %51, %52 : vector<16x1xf32>
    %54 = vector.broadcast %46 : vector<16x1xf32> to vector<16x32xf32>
    %55 = arith.subf %42, %54 : vector<16x32xf32>
    %cst_26 = arith.constant 9.99999974E-6 : f32
    %56 = vector.broadcast %cst_26 : f32 to vector<16x1xf32>
    %57 = arith.addf %53, %56 : vector<16x1xf32>
    %58 = math.rsqrt %57 : vector<16x1xf32>
    %59 = vector.broadcast %58 : vector<16x1xf32> to vector<16x32xf32>
    %60 = arith.mulf %55, %59 : vector<16x32xf32>
    %c0_27 = arith.constant 0 : index
    %c0_28 = arith.constant 0 : index
    %61 = vector.load %arg6[%c0_27, %c0_28] : memref<1x32xf32, #tpu.memory_space<vmem>>, vector<1x32xf32>
    %62 = vector.broadcast %61 : vector<1x32xf32> to vector<16x32xf32>
    %63 = arith.mulf %60, %62 : vector<16x32xf32>
    %c0_29 = arith.constant 0 : index
    %c0_30 = arith.constant 0 : index
    %64 = vector.load %arg7[%c0_29, %c0_30] : memref<1x32xf32, #tpu.memory_space<vmem>>, vector<1x32xf32>
    %65 = vector.broadcast %64 : vector<1x32xf32> to vector<16x32xf32>
    %66 = arith.addf %63, %65 : vector<16x32xf32>
    %c0_31 = arith.constant 0 : index
    %c0_32 = arith.constant 0 : index
    %67 = vector.load %arg8[%c0_31, %c0_32] : memref<32x32xf32, #tpu.memory_space<vmem>>, vector<32x32xf32>
    %cst_33 = arith.constant dense<0.000000e+00> : vector<128x32xf32>
    %68 = tpu.matmul %1, %67, %cst_33 {dimension_numbers = #tpu.dot_dimension_numbers<[1], [0], [0], [1], [0, 0, 1, 1], [], []>} : vector<128x32xf32>, vector<32x32xf32>, vector<128x32xf32> -> vector<128x32xf32>
    %c0_34 = arith.constant 0 : index
    %c0_35 = arith.constant 0 : index
    %69 = vector.load %arg9[%c0_34, %c0_35] : memref<1x32xf32, #tpu.memory_space<vmem>>, vector<1x32xf32>
    %70 = vector.broadcast %69 : vector<1x32xf32> to vector<128x32xf32>
    %71 = arith.addf %68, %70 : vector<128x32xf32>
    %c0_36 = arith.constant 0 : index
    %c0_37 = arith.constant 0 : index
    %72 = vector.load %arg10[%c0_36, %c0_37] : memref<32x32xf32, #tpu.memory_space<vmem>>, vector<32x32xf32>
    %cst_38 = arith.constant dense<0.000000e+00> : vector<16x32xf32>
    %73 = tpu.matmul %66, %72, %cst_38 {dimension_numbers = #tpu.dot_dimension_numbers<[1], [0], [0], [1], [0, 0, 1, 1], [], []>} : vector<16x32xf32>, vector<32x32xf32>, vector<16x32xf32> -> vector<16x32xf32>
    %c0_39 = arith.constant 0 : index
    %c0_40 = arith.constant 0 : index
    %74 = vector.load %arg11[%c0_39, %c0_40] : memref<1x32xf32, #tpu.memory_space<vmem>>, vector<1x32xf32>
    %75 = vector.broadcast %74 : vector<1x32xf32> to vector<16x32xf32>
    %76 = arith.addf %73, %75 : vector<16x32xf32>
    %c0_41 = arith.constant 0 : index
    %c0_42 = arith.constant 0 : index
    %77 = vector.load %arg12[%c0_41, %c0_42] : memref<32x32xf32, #tpu.memory_space<vmem>>, vector<32x32xf32>
    %cst_43 = arith.constant dense<0.000000e+00> : vector<16x32xf32>
    %78 = tpu.matmul %66, %77, %cst_43 {dimension_numbers = #tpu.dot_dimension_numbers<[1], [0], [0], [1], [0, 0, 1, 1], [], []>} : vector<16x32xf32>, vector<32x32xf32>, vector<16x32xf32> -> vector<16x32xf32>
    %c0_44 = arith.constant 0 : index
    %c0_45 = arith.constant 0 : index
    %79 = vector.load %arg13[%c0_44, %c0_45] : memref<1x32xf32, #tpu.memory_space<vmem>>, vector<1x32xf32>
    %80 = vector.broadcast %79 : vector<1x32xf32> to vector<16x32xf32>
    %81 = arith.addf %78, %80 : vector<16x32xf32>
    %82 = vector.shape_cast %71 : vector<128x32xf32> to vector<2x64x32xf32>
    %83 = vector.shape_cast %76 : vector<16x32xf32> to vector<2x8x32xf32>
    %84 = vector.shape_cast %81 : vector<16x32xf32> to vector<2x8x32xf32>
    "tpu.trace_start"() <{level = 10 : i32, message = "npc,nlc->npl"}> : () -> ()
    %cst_46 = arith.constant dense<0.000000e+00> : vector<2x64x8xf32>
    %85 = tpu.matmul %82, %83, %cst_46 {dimension_numbers = #tpu.dot_dimension_numbers<[2], [2], [1], [1], [0, 0, 0, 1, 1, 1], [0], [0]>} : vector<2x64x32xf32>, vector<2x8x32xf32>, vector<2x64x8xf32> -> vector<2x64x8xf32>
    "tpu.trace_stop"() : () -> ()
    %cst_47 = arith.constant dense<0xFF800000> : vector<2x64xf32>
    %86 = vector.multi_reduction <maximumf>, %85, %cst_47 [2] : vector<2x64x8xf32> to vector<2x64xf32>
    %87 = vector.shape_cast %86 : vector<2x64xf32> to vector<2x64x1xf32>
    %88 = vector.broadcast %87 : vector<2x64x1xf32> to vector<2x64x8xf32>
    %89 = arith.subf %85, %88 : vector<2x64x8xf32>
    %90 = math.exp %89 : vector<2x64x8xf32>
    %cst_48 = arith.constant dense<0.000000e+00> : vector<2x64xf32>
    %91 = vector.multi_reduction <add>, %90, %cst_48 [2] : vector<2x64x8xf32> to vector<2x64xf32>
    %92 = vector.shape_cast %91 : vector<2x64xf32> to vector<2x64x1xf32>
    %93 = vector.broadcast %92 : vector<2x64x1xf32> to vector<2x64x8xf32>
    %94 = arith.divf %90, %93 : vector<2x64x8xf32>
    "tpu.trace_start"() <{level = 10 : i32, message = "npl,nlc->npc"}> : () -> ()
    %cst_49 = arith.constant dense<0.000000e+00> : vector<2x64x32xf32>
    %95 = tpu.matmul %94, %84, %cst_49 {dimension_numbers = #tpu.dot_dimension_numbers<[2], [1], [1], [2], [0, 0, 0, 1, 1, 2], [0], [0]>} : vector<2x64x8xf32>, vector<2x8x32xf32>, vector<2x64x32xf32> -> vector<2x64x32xf32>
    "tpu.trace_stop"() : () -> ()
    %96 = arith.addf %0, %95 : vector<2x64x32xf32>
    %c0_50 = arith.constant 0 : index
    %c0_51 = arith.constant 0 : index
    %c0_52 = arith.constant 0 : index
    %97 = vector.load %arg14[%c0_50, %c0_51, %c0_52] : memref<2x64x32xf32, #tpu.memory_space<vmem>>, vector<2x64x32xf32>
    tpu.vector_store %arg14[%c0_50, %c0_51, %c0_52], %96 {strides = array<i32>} : memref<2x64x32xf32, #tpu.memory_space<vmem>>, vector<2x64x32xf32>,
    return
  }
  func.func @transform_0(%arg0: i32) -> (i32, i32, i32) {
    %c0_i32 = arith.constant 0 : i32
    %c0_i32_0 = arith.constant 0 : i32
    %c0_i32_1 = arith.constant 0 : i32
    %c0_i32_2 = arith.constant 0 : i32
    return %c0_i32, %c0_i32_0, %c0_i32_1 : i32, i32, i32
  }
  func.func @transform_1(%arg0: i32) -> (i32, i32) {
    %c0_i32 = arith.constant 0 : i32
    %c0_i32_0 = arith.constant 0 : i32
    %c0_i32_1 = arith.constant 0 : i32
    return %c0_i32, %c0_i32_0 : i32, i32
  }
  func.func @transform_2(%arg0: i32) -> (i32, i32) {
    %c0_i32 = arith.constant 0 : i32
    %c0_i32_0 = arith.constant 0 : i32
    %c0_i32_1 = arith.constant 0 : i32
    return %c0_i32, %c0_i32_0 : i32, i32
  }
  func.func @transform_3(%arg0: i32) -> (i32, i32) {
    %c0_i32 = arith.constant 0 : i32
    %c0_i32_0 = arith.constant 0 : i32
    %c0_i32_1 = arith.constant 0 : i32
    return %c0_i32, %c0_i32_0 : i32, i32
  }
  func.func @transform_4(%arg0: i32) -> (i32, i32) {
    %c0_i32 = arith.constant 0 : i32
    %c0_i32_0 = arith.constant 0 : i32
    %c0_i32_1 = arith.constant 0 : i32
    return %c0_i32, %c0_i32_0 : i32, i32
  }
  func.func @transform_5(%arg0: i32) -> (i32, i32) {
    %c0_i32 = arith.constant 0 : i32
    %c0_i32_0 = arith.constant 0 : i32
    %c0_i32_1 = arith.constant 0 : i32
    return %c0_i32, %c0_i32_0 : i32, i32
  }
  func.func @transform_6(%arg0: i32) -> (i32, i32) {
    %c0_i32 = arith.constant 0 : i32
    %c0_i32_0 = arith.constant 0 : i32
    %c0_i32_1 = arith.constant 0 : i32
    return %c0_i32, %c0_i32_0 : i32, i32
  }
  func.func @transform_7(%arg0: i32) -> (i32, i32) {
    %c0_i32 = arith.constant 0 : i32
    %c0_i32_0 = arith.constant 0 : i32
    %c0_i32_1 = arith.constant 0 : i32
    return %c0_i32, %c0_i32_0 : i32, i32
  }
  func.func @transform_8(%arg0: i32) -> (i32, i32) {
    %c0_i32 = arith.constant 0 : i32
    %c0_i32_0 = arith.constant 0 : i32
    %c0_i32_1 = arith.constant 0 : i32
    return %c0_i32, %c0_i32_0 : i32, i32
  }
  func.func @transform_9(%arg0: i32) -> (i32, i32) {
    %c0_i32 = arith.constant 0 : i32
    %c0_i32_0 = arith.constant 0 : i32
    %c0_i32_1 = arith.constant 0 : i32
    return %c0_i32, %c0_i32_0 : i32, i32
  }
  func.func @transform_10(%arg0: i32) -> (i32, i32) {
    %c0_i32 = arith.constant 0 : i32
    %c0_i32_0 = arith.constant 0 : i32
    %c0_i32_1 = arith.constant 0 : i32
    return %c0_i32, %c0_i32_0 : i32, i32
  }
  func.func @transform_11(%arg0: i32) -> (i32, i32) {
    %c0_i32 = arith.constant 0 : i32
    %c0_i32_0 = arith.constant 0 : i32
    %c0_i32_1 = arith.constant 0 : i32
    return %c0_i32, %c0_i32_0 : i32, i32
  }
  func.func @transform_12(%arg0: i32) -> (i32, i32) {
    %c0_i32 = arith.constant 0 : i32
    %c0_i32_0 = arith.constant 0 : i32
    %c0_i32_1 = arith.constant 0 : i32
    return %c0_i32, %c0_i32_0 : i32, i32
  }
  func.func @transform_13(%arg0: i32) -> (i32, i32, i32) {
    %c0_i32 = arith.constant 0 : i32
    %c0_i32_0 = arith.constant 0 : i32
    %c0_i32_1 = arith.constant 0 : i32
    %c0_i32_2 = arith.constant 0 : i32
    return %c0_i32, %c0_i32_0, %c0_i32_1 : i32, i32, i32
  }
  func.func @transform_14(%arg0: i32) -> (i32, i32, i32) {
    %c0_i32 = arith.constant 0 : i32
    %c0_i32_0 = arith.constant 0 : i32
    %c0_i32_1 = arith.constant 0 : i32
    %c0_i32_2 = arith.constant 0 : i32
    return %c0_i32, %c0_i32_0, %c0_i32_1 : i32, i32, i32
  }
}

</mosaic_0001>

<bundles_post_ra>
// kernel: _lambda_.1
= control target key start
LH: loop header
LB: loop body
LE: loop exit
PB: predicated region body
PF: predicated region fallthrough
CT: control target
= control target key end

     0   :  { %vm74_vm0 = vcmask 261120   ;;  %s3414_s0 = inlined_call_operand.vmem [shape: f32[2,64,32], index: 0, kind: input, shape index: {}]   ;;  %s3415_s1 = inlined_call_operand.vmem [shape: f32[32,8], index: 1, kind: input, shape index: {}]   ;;  %s3416_s2 = inlined_call_operand.vmem [shape: f32[1,8], index: 2, kind: input, shape index: {}]   ;;  %s3417_s3 = inlined_call_operand.vmem [shape: f32[32,32], index: 3, kind: input, shape index: {}]   ;;  %s3418_s4 = inlined_call_operand.vmem [shape: f32[1,32], index: 4, kind: input, shape index: {}]   ;;  %s3419_s5 = inlined_call_operand.vmem [shape: f32[1,32], index: 5, kind: input, shape index: {}]   ;;  %s3420_s6 = inlined_call_operand.vmem [shape: f32[1,32], index: 6, kind: input, shape index: {}]   ;;  %s3421_s7 = inlined_call_operand.vmem [shape: f32[32,32], index: 7, kind: input, shape index: {}]   ;;  %s3422_s8 = inlined_call_operand.vmem [shape: f32[1,32], index: 8, kind: input, shape index: {}]   ;;  %s3423_s9 = inlined_call_operand.vmem [shape: f32[32,32], index: 9, kind: input, shape index: {}]   ;;  %s3424_s10 = inlined_call_operand.vmem [shape: f32[1,32], index: 10, kind: input, shape index: {}]   ;;  %s3425_s11 = inlined_call_operand.vmem [shape: f32[32,32], index: 11, kind: input, shape index: {}]   ;;  %s3426_s12 = inlined_call_operand.vmem [shape: f32[1,32], index: 12, kind: input, shape index: {}]   ;;  %s3427_s13 = inlined_call_operand.vmem [shape: f32[2,64,32], index: 13, kind: output, shape index: {0}]   ;;  %s3428_s14 = inlined_call_operand.hbm [shape: f32[2,8,32], index: 14, kind: output, shape index: {1}]  }
   0x1   :  { %v63_v0 = vld [vmem:[%s3415_s1] sm:$0xff]  ;;  %v64_v1 = vld [vmem:[%s3415_s1 + $0x8] sm:$0xff]  ;;  %v65_v2 = vld [vmem:[%s3415_s1 + $0x10] sm:$0xff] }
   0x2   :  { %v2351_v3 = vpack.c.bf16 %v64_v1, %v63_v0  ;;  %v66_v4 = vld [vmem:[%s3415_s1 + $0x18] sm:$0xff]  ;;  %v2661_v5 = vld [vmem:[%s3414_s0] sm:$0xff]  ;;  %v269_v8 = vld [vmem:[%s3417_s3 + $0x8] sm:$0xff] }
   0x3   :  { %v2355_v6 = vpack.c.bf16 %v66_v4, %v65_v2  ;;  %2147 = vmatprep.mubr.msk.f32.mxu0 %vm74_vm0, %v2661_v5  ;;  %2179 = vmatprep.mubr.msk.f32.mxu1 %vm74_vm0, %v2661_v5  ;;  %v268_v7 = vld [vmem:[%s3417_s3] sm:$0xff]  ;;  %v270_v9 = vld [vmem:[%s3417_s3 + $0x10] sm:$0xff]  ;;  %v271_v10 = vld [vmem:[%s3417_s3 + $0x18] sm:$0xff] }
   0x4   :  { %2352 = vmatprep.subr.bf16.mxu0 %v2351_v3  ;;  %v2682_v11 = vld [vmem:[%s3414_s0 + $0x8] sm:$0xff]  ;;  %v2359_v12 = vpack.c.bf16 %v269_v8, %v268_v7  ;;  %v2363_v13 = vpack.c.bf16 %v271_v10, %v270_v9 }
   0x5   :  { %2354 = vmatpush3.bf16.msra.mxu0 %v2351_v3 }
   0x6   :  { %2356 = vmatprep.subr.bf16.mxu0 %v2355_v6 }
   0x9   :  { %2358 = vmatpush3.bf16.msra.mxu0 %v2355_v6 }
   0xa   :  { %20 = vsyncpa [#allocation3], 0  ;;  %v2687_v14 = vld [vmem:[%s3414_s0 + $0x10] sm:$0xff]  ;;  %2360 = vmatprep.subr.bf16.mxu1 %v2359_v12  ;;  %v2696_v15 = vld [vmem:[%s3414_s0 + $0x18] sm:$0xff]  ;;  %vm424_vm1 = vcmask 64512   ;;  %v2565_v44 = vmov 0.0|0.0  }
   0xb   :  { %2362 = vmatpush3.bf16.msra.mxu1 %v2359_v12  ;;  %v2701_v16 = vld [vmem:[%s3414_s0 + $0x20] sm:$0xff]  ;;  %v2710_v17 = vld [vmem:[%s3414_s0 + $0x28] sm:$0xff]  ;;  %v2715_v18 = vld [vmem:[%s3414_s0 + $0x30] sm:$0xff]  ;;  %2367 = vmatprep.subr.bf16.mxu0 %v2565_v44  ;;  %vm2566_vm2 = vmmov 0   ;;  %v2567_v50 = vmov 0.0   ;;  %vm532_vm3 = vcmask 523264  }
   0xc   :  { %2148 = vmatmul.mubr.msk.f32.vlgmr.msra.gmra.mrb[0].mxu0 %vm74_vm0, %v2682_v11  ;;  %2364 = vmatprep.subr.bf16.mxu1 %v2363_v13  ;;  %v2728_v19 = vld [vmem:[%s3414_s0 + $0x38] sm:$0xff]  ;;  %v2733_v20 = vld [vmem:[%s3414_s0 + $0x40] sm:$0xff]  ;;  %v2746_v21 = vld [vmem:[%s3414_s0 + $0x48] sm:$0xff] }
   0xd   :  { %2150 = vmatprep.mubr.msk.f32.mxu0 %vm74_vm0, %v2687_v14  ;;  %v2751_v22 = vld [vmem:[%s3414_s0 + $0x50] sm:$0xff]  ;;  %v2764_v23 = vld [vmem:[%s3414_s0 + $0x58] sm:$0xff]  ;;  %v2769_v24 = vld [vmem:[%s3414_s0 + $0x60] sm:$0xff] }
   0xe   :  { %v2782_v25 = vld [vmem:[%s3414_s0 + $0x68] sm:$0xff]  ;;  %v2787_v26 = vld [vmem:[%s3414_s0 + $0x70] sm:$0xff]  ;;  %v2800_v27 = vld [vmem:[%s3414_s0 + $0x78] sm:$0xff] }
   0xf   :  { %2366 = vmatpush3.bf16.msra.mxu1 %v2363_v13  ;;  %v2817_v30 = vld [vmem:[%s3416_s2] ss:$0 sm:$0xff] }
  0x10   :  { %2151 = vmatmul.mubr.msk.f32.gmra.mrb[2].mxu0 %vm74_vm0, %v2696_v15  ;;  %v2831_v39 = vld [vmem:[%s3418_s4] ss:$0 sm:$0xff]  ;;  %2379 = vmatprep.subr.bf16.mxu1 %v2565_v44 }
  0x11   :  { %2153 = vmatprep.mubr.msk.f32.mxu0 %vm74_vm0, %v2701_v16 }
  0x12   :  { %2180 = vmatmul.mubr.msk.f32.vlgmr.msra.gmra.mrb[0].mxu1 %vm74_vm0, %v2682_v11 }
  0x13   :  { %2182 = vmatprep.mubr.msk.f32.mxu1 %vm74_vm0, %v2687_v14 }
  0x14   :  { %2154 = vmatmul.mubr.msk.f32.gmra.mrb[4].mxu0 %vm74_vm0, %v2710_v17 }
  0x15   :  { %2156 = vmatprep.mubr.msk.f32.mxu0 %vm74_vm0, %v2715_v18 }
  0x16   :  { %2183 = vmatmul.mubr.msk.f32.gmra.mrb[2].mxu1 %vm74_vm0, %v2696_v15 }
  0x17   :  { %2185 = vmatprep.mubr.msk.f32.mxu1 %vm74_vm0, %v2701_v16 }
  0x18   :  { %2157 = vmatmul.mubr.msk.f32.gmra.mrb[6].mxu0 %vm74_vm0, %v2728_v19 }
  0x19   :  { %2159 = vmatprep.mubr.msk.f32.mxu0 %vm74_vm0, %v2733_v20 }
  0x1a   :  { %2186 = vmatmul.mubr.msk.f32.gmra.mrb[4].mxu1 %vm74_vm0, %v2710_v17 }
  0x1b   :  { %2188 = vmatprep.mubr.msk.f32.mxu1 %vm74_vm0, %v2715_v18 }
  0x1c   :  { %2160 = vmatmul.mubr.msk.f32.gmra.mrb[8].mxu0 %vm74_vm0, %v2746_v21 }
  0x1d   :  { %2162 = vmatprep.mubr.msk.f32.mxu0 %vm74_vm0, %v2751_v22 }
  0x1e   :  { %2189 = vmatmul.mubr.msk.f32.gmra.mrb[6].mxu1 %vm74_vm0, %v2728_v19 }
  0x1f   :  { %2191 = vmatprep.mubr.msk.f32.mxu1 %vm74_vm0, %v2733_v20 }
  0x20   :  { %2163 = vmatmul.mubr.msk.f32.gmra.mrb[10].mxu0 %vm74_vm0, %v2764_v23 }
  0x21   :  { %2165 = vmatprep.mubr.msk.f32.mxu0 %vm74_vm0, %v2769_v24 }
  0x22   :  { %2192 = vmatmul.mubr.msk.f32.gmra.mrb[8].mxu1 %vm74_vm0, %v2746_v21 }
  0x23   :  { %2194 = vmatprep.mubr.msk.f32.mxu1 %vm74_vm0, %v2751_v22 }
  0x24   :  { %2166 = vmatmul.mubr.msk.f32.gmra.mrb[12].mxu0 %vm74_vm0, %v2782_v25 }
  0x25   :  { %2168 = vmatprep.mubr.msk.f32.mxu0 %vm74_vm0, %v2787_v26 }
  0x26   :  { %2195 = vmatmul.mubr.msk.f32.gmra.mrb[10].mxu1 %vm74_vm0, %v2764_v23 }
  0x27   :  { %2197 = vmatprep.mubr.msk.f32.mxu1 %vm74_vm0, %v2769_v24 }
  0x28   :  { %2169 = vmatmul.mubr.msk.f32.gmra.mrb[14].mxu0 %vm74_vm0, %v2800_v27 }
  0x29   :  { %2219 = vmatprep.mubr.msk.f32.mxu0 %vm2566_vm2, %v2567_v50 }
  0x2a   :  { %2198 = vmatmul.mubr.msk.f32.gmra.mrb[12].mxu1 %vm74_vm0, %v2782_v25 }
  0x2b   :  { %2200 = vmatprep.mubr.msk.f32.mxu1 %vm74_vm0, %v2787_v26 }
  0x2e   :  { %2201 = vmatmul.mubr.msk.f32.gmra.mrb[14].mxu1 %vm74_vm0, %v2800_v27 }
  0x2f   :  { %2238 = vmatprep.mubr.msk.f32.mxu1 %vm2566_vm2, %v2567_v50 }
  0xdf   :  { %v2149_v28 = vpop.f32.mrb[0].mxu0 }
  0xe0   :  { %v189_v29 = vpop.f32.mrb[1].mxu0  ;;  %v2820_v33 = vadd.f32 %v2149_v28, %v2817_v30 }
  0xe1   :  { %v2823_v34 = vadd.f32 %v2817_v30, %v189_v29 }
  0xe2   :  { %v426_v40 = vsel %vm424_vm1, %v2820_v33, -inf }
  0xe3   :  { %v2152_v31 = vpop.f32.mrb[2].mxu0  ;;  %v425_v45 = vsel %vm424_vm1, %v2823_v34, -inf }
  0xe4   :  { %v199_v32 = vpop.f32.mrb[3].mxu0  ;;  %v2844_v46 = vadd.f32 %v2152_v31, %v2817_v30 }
  0xe5   :  { %v2181_v38 = vpop.f32.mrb[0].mxu1  ;;  %v2850_v51 = vadd.f32 %v2817_v30, %v199_v32 }
  0xe6   :  { %v351_v42 = vadd.f32 %v2181_v38, %v2831_v39  ;;  %v345_v43 = vpop.f32.mrb[1].mxu1  ;;  %v428_v63 = vsel %vm424_vm1, %v2844_v46, -inf }
  0xe7   :  { %v2155_v35 = vpop.f32.mrb[4].mxu0  ;;  %v346_v48 = vadd.f32 %v2831_v39, %v345_v43  ;;  %v427_v4 = vsel %vm424_vm1, %v2850_v51, -inf }
  0xe8   :  { %v2826_v36 = vadd.f32 %v2155_v35, %v2817_v30  ;;  %v209_v37 = vpop.f32.mrb[5].mxu0 }
  0xe9   :  { %v2836_v41 = vadd.f32 %v2817_v30, %v209_v37  ;;  %v2184_v49 = vpop.f32.mrb[2].mxu1  ;;  %v2368_v60 = vpack.c.bf16 %v351_v42, %v346_v48 }
  0xea   :  { %v431_v47 = vsel %vm424_vm1, %v2826_v36, -inf  ;;  %v361_v55 = vadd.f32 %v2184_v49, %v2831_v39  ;;  %v355_v56 = vpop.f32.mrb[3].mxu1 }
  0xeb   :  { %v432_v52 = vmax.f32 %v426_v40, %v431_v47  ;;  %v429_v53 = vsel %vm424_vm1, %v2836_v41, -inf  ;;  %v2158_v54 = vpop.f32.mrb[6].mxu0  ;;  %v356_v61 = vadd.f32 %v2831_v39, %v355_v56  ;;  %2369 = vmatpush3.bf16.msra.mxu0 %v2368_v60 }
  0xec   :  { %v430_v57 = vmax.f32 %v425_v45, %v429_v53  ;;  %v2856_v58 = vadd.f32 %v2158_v54, %v2817_v30  ;;  %v219_v59 = vpop.f32.mrb[7].mxu0  ;;  %2370 = vmatprep.subr.bf16.mxu0 %v2565_v44 }
  0xed   :  { %v2860_v62 = vadd.f32 %v2817_v30, %v219_v59  ;;  %v2371_v2 = vpack.c.bf16 %v361_v55, %v356_v61  ;;  %v2187_v3 = vpop.f32.mrb[4].mxu1 }
  0xee   :  { %v437_v0 = vmax.f32 %v430_v57, %v432_v52  ;;  %v435_v1 = vsel %vm424_vm1, %v2856_v58, -inf  ;;  %v371_v9 = vadd.f32 %v2187_v3, %v2831_v39  ;;  %v365_v10 = vpop.f32.mrb[5].mxu1 }
  0xef   :  { %v436_v6 = vmax.f32 %v428_v63, %v435_v1  ;;  %v433_v7 = vsel %vm424_vm1, %v2860_v62, -inf  ;;  %v2161_v8 = vpop.f32.mrb[8].mxu0  ;;  %v366_v28 = vadd.f32 %v2831_v39, %v365_v10  ;;  %2372 = vmatpush3.bf16.msra.mxu0 %v2371_v2 }
  0xf0   :  { %v434_v12 = vmax.f32 %v427_v4, %v433_v7  ;;  %v229_v13 = vpop.f32.mrb[9].mxu0  ;;  %2373 = vmatprep.subr.bf16.mxu0 %v2565_v44  ;;  %v2877_v45 = vadd.f32 %v2161_v8, %v2817_v30 }
  0xf1   :  { %v2374_v31 = vpack.c.bf16 %v371_v9, %v366_v28  ;;  %v2190_v32 = vpop.f32.mrb[6].mxu1  ;;  %v2880_v48 = vadd.f32 %v2817_v30, %v229_v13 }
  0xf2   :  { %v438_v29 = vmax.f32 %v434_v12, %v436_v6  ;;  %v381_v37 = vadd.f32 %v2190_v32, %v2831_v39  ;;  %v375_v38 = vpop.f32.mrb[7].mxu1  ;;  %v608_v60 = vsel %vm424_vm1, %v2877_v45, -inf }
  0xf3   :  { %v2164_v35 = vpop.f32.mrb[10].mxu0  ;;  %v376_v43 = vadd.f32 %v2831_v39, %v375_v38  ;;  %2375 = vmatpush3.bf16.msra.mxu0 %v2374_v31  ;;  %v607_v1 = vsel %vm424_vm1, %v2880_v48, -inf }
  0xf4   :  { %v439_v40 = vmax.f32 %v437_v0, %v438_v29  ;;  %v239_v42 = vpop.f32.mrb[11].mxu0  ;;  %2376 = vmatprep.subr.bf16.mxu0 %v2565_v44  ;;  %v2891_v61 = vadd.f32 %v2164_v35, %v2817_v30 }
  0xf5   :  { %v2377_v49 = vpack.c.bf16 %v381_v37, %v376_v43  ;;  %v2193_v50 = vpop.f32.mrb[8].mxu1  ;;  %v2901_v6 = vadd.f32 %v2817_v30, %v239_v42 }
  0xf6   :  { %v440_v47 = vrot.slane %v439_v40, 4  ;;  %v391_v53 = vadd.f32 %v2193_v50, %v2831_v39  ;;  %v385_v54 = vpop.f32.mrb[9].mxu1  ;;  %v610_v35 = vsel %vm424_vm1, %v2891_v61, -inf }
  0xf7   :  { %v2167_v52 = vpop.f32.mrb[12].mxu0  ;;  %v386_v59 = vadd.f32 %v2831_v39, %v385_v54  ;;  %2378 = vmatpush3.bf16.msra.mxu0 %v2377_v49  ;;  %v609_v49 = vsel %vm424_vm1, %v2901_v6, -inf }
  0xf8   :  { %v441_v55 = vmax.f32 %v439_v40, %v440_v47  ;;  %v2885_v56 = vadd.f32 %v2167_v52, %v2817_v30  ;;  %v249_v57 = vpop.f32.mrb[13].mxu0 }
  0xf9   :  { %v2894_v63 = vadd.f32 %v2817_v30, %v249_v57  ;;  %v2380_v3 = vpack.c.bf16 %v391_v53, %v386_v59  ;;  %v2196_v4 = vpop.f32.mrb[10].mxu1 }
  0xfa   :  { %v442_v0 = vrot.slane %v441_v55, 2  ;;  %v613_v2 = vsel %vm424_vm1, %v2885_v56, -inf  ;;  %v401_v10 = vadd.f32 %v2196_v4, %v2831_v39  ;;  %v395_v12 = vpop.f32.mrb[11].mxu1 }
  0xfb   :  { %v614_v7 = vmax.f32 %v608_v60, %v613_v2  ;;  %v611_v8 = vsel %vm424_vm1, %v2894_v63, -inf  ;;  %v2170_v9 = vpop.f32.mrb[14].mxu0  ;;  %2381 = vmatpush3.bf16.msra.mxu1 %v2380_v3  ;;  %v396_v32 = vadd.f32 %v2831_v39, %v395_v12 }
  0xfc   :  { %v443_v13 = vmax.f32 %v441_v55, %v442_v0  ;;  %v612_v28 = vmax.f32 %v607_v1, %v611_v8  ;;  %v2907_v29 = vadd.f32 %v2170_v9, %v2817_v30  ;;  %v259_v31 = vpop.f32.mrb[15].mxu0  ;;  %2382 = vmatprep.subr.bf16.mxu1 %v2565_v44 }
  0xfd   :  { %v2913_v37 = vadd.f32 %v2817_v30, %v259_v31  ;;  %v2383_v43 = vpack.c.bf16 %v401_v10, %v396_v32  ;;  %v2199_v47 = vpop.f32.mrb[12].mxu1 }
  0xfe   :  { %v444_v38 = vrot.slane %v443_v13, 1  ;;  %v619_v40 = vmax.f32 %v612_v28, %v614_v7  ;;  %v617_v42 = vsel %vm424_vm1, %v2907_v29, -inf  ;;  %v405_v53 = vpop.f32.mrb[13].mxu1  ;;  %v411_v55 = vadd.f32 %v2199_v47, %v2831_v39 }
  0xff   :  { %v618_v50 = vmax.f32 %v610_v35, %v617_v42  ;;  %v615_v52 = vsel %vm424_vm1, %v2913_v37, -inf  ;;  %2384 = vmatpush3.bf16.msra.mxu1 %v2383_v43  ;;  %v406_v57 = vadd.f32 %v2831_v39, %v405_v53 }
 0x100   :  { %v445_v54 = vmax.f32 %v443_v13, %v444_v38  ;;  %v616_v30 = vmax.f32 %v609_v49, %v615_v52  ;;  %2385 = vmatprep.subr.bf16.mxu1 %v2565_v44 }
 0x101   :  { %v2386_v13 = vpack.c.bf16 %v411_v55, %v406_v57 }
 0x102   :  { %v452_v59 = vsub.f32 %v2860_v62, %v445_v54  ;;  %v453_v60 = vsub.f32 %v2856_v58, %v445_v54  ;;  %v620_v0 = vmax.f32 %v616_v30, %v618_v50  ;;  %v446_v1 = vsub.f32 %v2823_v34, %v445_v54 }
 0x103   :  { %v447_v2 = vsub.f32 %v2820_v33, %v445_v54  ;;  %v448_v3 = vsub.f32 %v2850_v51, %v445_v54  ;;  %v449_v4 = vsub.f32 %v2844_v46, %v445_v54  ;;  %v450_v7 = vsub.f32 %v2836_v41, %v445_v54  ;;  %2387 = vmatpush3.bf16.msra.mxu1 %v2386_v13 }
 0x104   :  { %v621_v8 = vmax.f32 %v619_v40, %v620_v0  ;;  %v451_v9 = vsub.f32 %v2826_v36, %v445_v54  ;;  %v454_v10 = vmul.f32 1.442695, %v446_v1  ;;  %2388 = vmatprep.subr.bf16.mxu1 %v2565_v44  ;;  %v466_v51 = vmul.f32 1.442695, %v452_v59 }
 0x105   :  { %v456_v12 = vmul.f32 1.442695, %v447_v2  ;;  %v458_v28 = vmul.f32 1.442695, %v448_v3  ;;  %v460_v58 = vmul.f32 1.442695, %v449_v4 }
 0x106   :  { %v622_v62 = vrot.slane %v621_v8, 4  ;;  %2421 = vpow2.f32 %v454_v10  ;;  %v462_v33 = vmul.f32 1.442695, %v450_v7  ;;  %v464_v41 = vmul.f32 1.442695, %v451_v9 }
 0x107   :  { %2423 = vpow2.f32 %v456_v12  ;;  %v468_v36 = vmul.f32 1.442695, %v453_v60 }
 0x108   :  { %v623_v31 = vmax.f32 %v621_v8, %v622_v62  ;;  %2425 = vpow2.f32 %v458_v28 }
 0x109   :  { %2427 = vpow2.f32 %v460_v58 }
 0x10a   :  { %v624_v34 = vrot.slane %v623_v31, 2  ;;  %2429 = vpow2.f32 %v462_v33 }
 0x10b   :  { %2431 = vpow2.f32 %v464_v41 }
 0x10c   :  { %v625_v46 = vmax.f32 %v623_v31, %v624_v34  ;;  %2433 = vpow2.f32 %v466_v51 }
 0x10d   :  { %2435 = vpow2.f32 %v468_v36 }
 0x10e   :  { %v626_v32 = vrot.slane %v625_v46, 1 }
 0x110   :  { %v627_v35 = vmax.f32 %v625_v46, %v626_v32  ;;  %v2934_v38 = vpop.eup %2421 }
 0x111   :  { %v2939_v43 = vpop.eup %2423  ;;  %v470_v47 = vsel %vm424_vm1, %v2934_v38, 0.0 }
 0x112   :  { %v634_v40 = vsub.f32 %v2913_v37, %v627_v35  ;;  %v635_v44 = vsub.f32 %v2907_v29, %v627_v35  ;;  %v628_v42 = vsub.f32 %v2880_v48, %v627_v35  ;;  %v629_v49 = vsub.f32 %v2877_v45, %v627_v35  ;;  %v2946_v53 = vpop.eup %2425 }
 0x113   :  { %v630_v50 = vsub.f32 %v2901_v6, %v627_v35  ;;  %v631_v52 = vsub.f32 %v2891_v61, %v627_v35  ;;  %v471_v37 = vsel %vm424_vm1, %v2939_v43, 0.0  ;;  %v632_v29 = vsub.f32 %v2894_v63, %v627_v35  ;;  %v2951_v54 = vpop.eup %2427 }
 0x114   :  { %v472_v48 = vadd.f32 %v471_v37, %v470_v47  ;;  %v633_v30 = vsub.f32 %v2885_v56, %v627_v35  ;;  %v636_v55 = vmul.f32 1.442695, %v628_v42  ;;  %v473_v45 = vsel %vm424_vm1, %v2946_v53, 0.0  ;;  %v2956_v59 = vpop.eup %2429 }
 0x115   :  { %v638_v57 = vmul.f32 1.442695, %v629_v49  ;;  %v640_v6 = vmul.f32 1.442695, %v630_v50  ;;  %v642_v60 = vmul.f32 1.442695, %v631_v52  ;;  %v2960_v63 = vpop.eup %2431 }
 0x116   :  { %v474_v61 = vadd.f32 %v473_v45, %v472_v48  ;;  %v475_v0 = vsel %vm424_vm1, %v2951_v54, 0.0  ;;  %2437 = vpow2.f32 %v636_v55  ;;  %v644_v2 = vmul.f32 1.442695, %v632_v29  ;;  %v2434_v3 = vpop.eup %2433 }
 0x117   :  { %2439 = vpow2.f32 %v638_v57  ;;  %v477_v56 = vsel %vm424_vm1, %v2956_v59, 0.0  ;;  %v646_v7 = vmul.f32 1.442695, %v633_v30  ;;  %v2436_v8 = vpop.eup %2435  ;;  %v479_v9 = vsel %vm424_vm1, %v2960_v63, 0.0 }
 0x118   :  { %v476_v1 = vadd.f32 %v475_v0, %v474_v61  ;;  %2441 = vpow2.f32 %v640_v6  ;;  %v648_v10 = vmul.f32 1.442695, %v634_v40  ;;  %v481_v13 = vsel %vm424_vm1, %v2434_v3, 0.0 }
 0x119   :  { %2443 = vpow2.f32 %v642_v60  ;;  %v650_v62 = vmul.f32 1.442695, %v635_v44  ;;  %v483_v58 = vsel %vm424_vm1, %v2436_v8, 0.0 }
 0x11a   :  { %v478_v4 = vadd.f32 %v477_v56, %v476_v1  ;;  %2445 = vpow2.f32 %v644_v2 }
 0x11b   :  { %2447 = vpow2.f32 %v646_v7 }
 0x11c   :  { %v480_v12 = vadd.f32 %v479_v9, %v478_v4  ;;  %2449 = vpow2.f32 %v648_v10 }
 0x11d   :  { %2451 = vpow2.f32 %v650_v62 }
 0x11e   :  { %v482_v28 = vadd.f32 %v481_v13, %v480_v12 }
 0x120   :  { %v484_v31 = vadd.f32 %v483_v58, %v482_v28  ;;  %v2438_v33 = vpop.eup %2437 }
 0x121   :  { %v2440_v34 = vpop.eup %2439  ;;  %v652_v46 = vsel %vm424_vm1, %v2438_v33, 0.0 }
 0x122   :  { %v485_v41 = vrot.slane %v484_v31, 4  ;;  %v2442_v51 = vpop.eup %2441  ;;  %v653_v36 = vsel %vm424_vm1, %v2440_v34, 0.0 }
 0x123   :  { %v2444_v32 = vpop.eup %2443  ;;  %v654_v40 = vadd.f32 %v653_v36, %v652_v46  ;;  %v655_v44 = vsel %vm424_vm1, %v2442_v51, 0.0 }
 0x124   :  { %v486_v35 = vadd.f32 %v485_v41, %v484_v31  ;;  %v2446_v42 = vpop.eup %2445  ;;  %v657_v50 = vsel %vm424_vm1, %v2444_v32, 0.0 }
 0x125   :  { %v656_v49 = vadd.f32 %v655_v44, %v654_v40  ;;  %v2448_v52 = vpop.eup %2447  ;;  %v659_v48 = vsel %vm424_vm1, %v2446_v42, 0.0  ;;  %v2202_v44 = vpop.f32.mrb[14].mxu1 }
 0x126   :  { %v487_v47 = vrot.slane %v486_v35, 2  ;;  %v2450_v30 = vpop.eup %2449  ;;  %v661_v57 = vsel %vm424_vm1, %v2448_v52, 0.0 }
 0x127   :  { %v658_v29 = vadd.f32 %v657_v50, %v656_v49  ;;  %v2452_v6 = vpop.eup %2451  ;;  %v663_v0 = vsel %vm424_vm1, %v2450_v30, 0.0  ;;  %v415_v49 = vpop.f32.mrb[15].mxu1 }
 0x128   :  { %v488_v37 = vadd.f32 %v487_v47, %v486_v35  ;;  %v665_v2 = vsel %vm424_vm1, %v2452_v6, 0.0  ;;  %v421_v47 = vadd.f32 %v2202_v44, %v2831_v39 }
 0x129   :  { %v660_v45 = vadd.f32 %v659_v48, %v658_v29 }
 0x12a   :  { %v489_v55 = vrot.slane %v488_v37, 1 }
 0x12b   :  { %v662_v60 = vadd.f32 %v661_v57, %v660_v45  ;;  %v837_v57 = vld [vmem:[%s3421_s7 + $0x18] sm:$0xff] }
 0x12c   :  { %v490_v61 = vadd.f32 %v489_v55, %v488_v37  ;;  %v836_v55 = vld [vmem:[%s3421_s7 + $0x10] sm:$0xff] }
 0x12d   :  { %v664_v1 = vadd.f32 %v663_v0, %v662_v60  ;;  %v993_v60 = vld [vmem:[%s3423_s9 + $0x18] sm:$0xff] }
 0x12e   :  { %2453 = vrcp.f32 %v490_v61  ;;  %v992_v61 = vld [vmem:[%s3423_s9 + $0x10] sm:$0xff] }
 0x12f   :  { %v666_v56 = vadd.f32 %v665_v2, %v664_v1  ;;  %v2403_v1 = vpack.c.bf16 %v993_v60, %v992_v61  ;;  %v1084_v2 = vld [vmem:[%s3425_s11 + $0x10] sm:$0xff] }
 0x131   :  { %v667_v4 = vrot.slane %v666_v56, 4 }
 0x133   :  { %v668_v7 = vadd.f32 %v667_v4, %v666_v56  ;;  %v1085_v56 = vld [vmem:[%s3425_s11 + $0x18] sm:$0xff] }
 0x134   :  { %v2411_v4 = vpack.c.bf16 %v1085_v56, %v1084_v2 }
 0x135   :  { %v669_v9 = vrot.slane %v668_v7, 2 }
 0x137   :  { %v670_v12 = vadd.f32 %v669_v9, %v668_v7  ;;  %v1956_v7 = vld [vmem:[%s3422_s8] ss:$0 sm:$0xff] }
 0x138   :  { %v2454_v10 = vpop.eup %2453 }
 0x139   :  { %v492_v13 = vmul.f32 %v2454_v10, %v2934_v38  ;;  %v493_v62 = vmul.f32 %v2454_v10, %v2939_v43  ;;  %v494_v28 = vmul.f32 %v2454_v10, %v2946_v53  ;;  %v495_v58 = vmul.f32 %v2454_v10, %v2951_v54 }
 0x13a   :  { %v671_v31 = vrot.slane %v670_v12, 1  ;;  %v496_v41 = vmul.f32 %v2454_v10, %v2956_v59  ;;  %v497_v46 = vmul.f32 %v2454_v10, %v2960_v63  ;;  %v498_v36 = vmul.f32 %v2454_v10, %v2434_v3 }
 0x13b   :  { %500 = vxpose.xlu0.b32.start [1/8] (short) (narrow) %v492_v13, 8  ;;  %v499_v35 = vmul.f32 %v2454_v10, %v2436_v8  ;;  %v416_v38 = vadd.f32 %v2831_v39, %v415_v49 }
 0x13c   :  { %v672_v40 = vadd.f32 %v671_v31, %v670_v12 }
 0x13d   :  { %v2389_v43 = vpack.c.bf16 %v421_v47, %v416_v38 }
 0x13e   :  { %2455 = vrcp.f32 %v672_v40 }
 0x13f   :  { %501 = vxpose.xlu0.b32.cont [2/8] (short) (narrow) %v493_v62, 8  ;;  %2390 = vmatpush3.bf16.msra.mxu1 %v2389_v43 }
 0x143   :  { %502 = vxpose.xlu0.b32.cont [3/8] (short) (narrow) %v494_v28, 8 }
 0x147   :  { %503 = vxpose.xlu0.b32.cont [4/8] (short) (narrow) %v495_v58, 8 }
 0x148   :  { %v2456_v53 = vpop.eup %2455 }
 0x149   :  { %v674_v54 = vmul.f32 %v2456_v53, %v2438_v33  ;;  %v675_v59 = vmul.f32 %v2456_v53, %v2440_v34  ;;  %v676_v63 = vmul.f32 %v2456_v53, %v2442_v51  ;;  %v677_v3 = vmul.f32 %v2456_v53, %v2444_v32 }
 0x14a   :  { %v678_v50 = vmul.f32 %v2456_v53, %v2446_v42  ;;  %v679_v8 = vmul.f32 %v2456_v53, %v2448_v52  ;;  %v680_v37 = vmul.f32 %v2456_v53, %v2450_v30  ;;  %v681_v29 = vmul.f32 %v2456_v53, %v2452_v6  ;;  %v835_v30 = vld [vmem:[%s3421_s7 + $0x8] sm:$0xff] }
 0x14b   :  { %682 = vxpose.xlu1.b32.start [1/8] (short) (narrow) %v674_v54, 8  ;;  %504 = vxpose.xlu0.b32.cont [5/8] (short) (narrow) %v496_v41, 8  ;;  %v2395_v6 = vpack.c.bf16 %v837_v57, %v836_v55  ;;  %v1955_v57 = vld [vmem:[%s3420_s6] ss:$0 sm:$0xff] }
 0x14f   :  { %683 = vxpose.xlu1.b32.cont [2/8] (short) (narrow) %v675_v59, 8  ;;  %505 = vxpose.xlu0.b32.cont [6/8] (short) (narrow) %v497_v46, 8 }
 0x153   :  { %684 = vxpose.xlu1.b32.cont [3/8] (short) (narrow) %v676_v63, 8  ;;  %506 = vxpose.xlu0.b32.cont [7/8] (short) (narrow) %v498_v36, 8 }
 0x157   :  { %685 = vxpose.xlu1.b32.cont [4/8] (short) (narrow) %v677_v3, 8  ;;  %507 = vxpose.xlu0.b32.end [8/8] (short) (narrow) %v499_v35, 8 }
 0x15b   :  { %686 = vxpose.xlu1.b32.cont [5/8] (short) (narrow) %v678_v50, 8 }
 0x15f   :  { %687 = vxpose.xlu1.b32.cont [6/8] (short) (narrow) %v679_v8, 8 }
 0x163   :  { %688 = vxpose.xlu1.b32.cont [7/8] (short) (narrow) %v680_v37, 8 }
 0x167   :  { %689 = vxpose.xlu1.b32.end [8/8] (short) (narrow) %v681_v29, 8 }
 0x1bb   :  { %v516_v39 = vpop.trf.xlu0 }
 0x1bc   :  { %2220 = vmatmul.mubr.msk.f32.vlgmr.msra.gmra.mrb[16].mxu0 %vm532_vm3, %v516_v39 }
 0x1bd   :  { %2249 = vmatprep.mubr.msk.f32.mxu0 %vm74_vm0, %v2661_v5  ;;  %v834_v5 = vld [vmem:[%s3421_s7] sm:$0xff] }
 0x1be   :  { %v2391_v45 = vpack.c.bf16 %v835_v30, %v834_v5  ;;  %v1954_v5 = vld [vmem:[%s3419_s5] ss:$0 sm:$0xff] }
 0x1c0   :  { %2392 = vmatprep.subr.bf16.mxu0 %v2391_v45 }
 0x1c1   :  { %2394 = vmatpush3.bf16.msra.mxu0 %v2391_v45 }
 0x1c2   :  { %2396 = vmatprep.subr.bf16.mxu0 %v2395_v6 }
 0x1c5   :  { %2398 = vmatpush3.bf16.msra.mxu0 %v2395_v6 }
 0x1c8   :  { %2250 = vmatmul.mubr.msk.f32.vlgmr.msra.gmra.mrb[18].mxu0 %vm74_vm0, %v2682_v11 }
 0x1c9   :  { %2252 = vmatprep.mubr.msk.f32.mxu0 %vm74_vm0, %v2687_v14 }
 0x1cb   :  { %v698_v33 = vpop.trf.xlu1 }
 0x1cc   :  { %2239 = vmatmul.mubr.msk.f32.vlgmr.msra.gmra.mrb[16].mxu1 %vm532_vm3, %v698_v33  ;;  %2253 = vmatmul.mubr.msk.f32.gmra.mrb[20].mxu0 %vm74_vm0, %v2696_v15 }
 0x1cd   :  { %2255 = vmatprep.mubr.msk.f32.mxu0 %vm74_vm0, %v2701_v16 }
 0x1d0   :  { %2256 = vmatmul.mubr.msk.f32.gmra.mrb[22].mxu0 %vm74_vm0, %v2710_v17 }
 0x1d1   :  { %2258 = vmatprep.mubr.msk.f32.mxu0 %vm74_vm0, %v2715_v18 }
 0x1d4   :  { %2259 = vmatmul.mubr.msk.f32.gmra.mrb[24].mxu0 %vm74_vm0, %v2728_v19 }
 0x1d5   :  { %2261 = vmatprep.mubr.msk.f32.mxu0 %vm74_vm0, %v2733_v20 }
 0x1d8   :  { %2262 = vmatmul.mubr.msk.f32.gmra.mrb[26].mxu0 %vm74_vm0, %v2746_v21 }
 0x1d9   :  { %2264 = vmatprep.mubr.msk.f32.mxu0 %vm74_vm0, %v2751_v22 }
 0x1dc   :  { %2265 = vmatmul.mubr.msk.f32.gmra.mrb[28].mxu0 %vm74_vm0, %v2764_v23  ;;  %v990_v23 = vld [vmem:[%s3423_s9] sm:$0xff] }
 0x1dd   :  { %2267 = vmatprep.mubr.msk.f32.mxu0 %vm74_vm0, %v2769_v24  ;;  %v991_v24 = vld [vmem:[%s3423_s9 + $0x8] sm:$0xff] }
 0x1e0   :  { %2268 = vmatmul.mubr.msk.f32.gmra.mrb[30].mxu0 %vm74_vm0, %v2782_v25  ;;  %v2399_v25 = vpack.c.bf16 %v991_v24, %v990_v23 }
 0x1e1   :  { %2270 = vmatprep.mubr.msk.f32.mxu0 %vm74_vm0, %v2787_v26  ;;  %v1082_v26 = vld [vmem:[%s3425_s11] sm:$0xff] }
 0x1e2   :  { %2400 = vmatprep.subr.bf16.mxu0 %v2399_v25 }
 0x1e3   :  { %2402 = vmatpush3.bf16.msra.mxu0 %v2399_v25 }
 0x1e4   :  { %2271 = vmatmul.mubr.msk.f32.gmra.mrb[32].mxu0 %vm74_vm0, %v2800_v27  ;;  %v1083_v27 = vld [vmem:[%s3425_s11 + $0x8] sm:$0xff]  ;;  %2404 = vmatprep.subr.bf16.mxu0 %v2403_v1 }
 0x1e5   :  { %v2407_v0 = vpack.c.bf16 %v1083_v27, %v1082_v26 }
 0x1e7   :  { %2408 = vmatprep.subr.bf16.mxu1 %v2407_v0  ;;  %2406 = vmatpush3.bf16.msra.mxu0 %v2403_v1 }
 0x1e8   :  { %2410 = vmatpush3.bf16.msra.mxu1 %v2407_v0 }
 0x1e9   :  { %2412 = vmatprep.subr.bf16.mxu1 %v2411_v4 }
 0x1ec   :  { %2414 = vmatpush3.bf16.msra.mxu1 %v2411_v4 }
 0x28f   :  { %v602_v34 = vpop.f32.mrb[16].mxu0 }
 0x290   :  { %606 = vst.msk [vmem:[#allocation2] sm:$0xff] %vm74_vm0, %v602_v34  ;;  %v789_v51 = vsel %vm74_vm0, %v602_v34, 0.0  ;;  %v2221_v32 = vpop.f32.mrb[17].mxu0 }
 0x291   :  { %790 = vadd.xlane.f32.xlu0 %v789_v51 }
 0x29b   :  { %v2251_v9 = vpop.f32.mrb[18].mxu0 }
 0x29c   :  { %v3069_v10 = vadd.f32 %v2251_v9, %v1956_v7  ;;  %v911_v12 = vpop.f32.mrb[19].mxu0 }
 0x29f   :  { %v783_v42 = vpop.f32.mrb[16].mxu1  ;;  %v2254_v13 = vpop.f32.mrb[20].mxu0 }
 0x2a0   :  { %788 = vst.msk [vmem:[#allocation2 + $0x8] sm:$0xff] %vm74_vm0, %v783_v42  ;;  %v2240_v52 = vpop.f32.mrb[17].mxu1  ;;  %v792_v48 = vsel %vm74_vm0, %v783_v42, 0.0  ;;  %v3071_v62 = vadd.f32 %v2254_v13, %v1956_v7  ;;  %v921_v28 = vpop.f32.mrb[21].mxu0 }
 0x2a1   :  { %793 = vadd.xlane.f32.xlu1 %v792_v48  ;;  %v3073_v58 = vadd.f32 %v1956_v7, %v921_v28 }
 0x2a3   :  { %v2257_v31 = vpop.f32.mrb[22].mxu0 }
 0x2a4   :  { %v3075_v41 = vadd.f32 %v2257_v31, %v1956_v7  ;;  %v931_v46 = vpop.f32.mrb[23].mxu0 }
 0x2a5   :  { %v3077_v36 = vadd.f32 %v1956_v7, %v931_v46 }
 0x2a7   :  { %v2260_v35 = vpop.f32.mrb[24].mxu0 }
 0x2a8   :  { %v3079_v40 = vadd.f32 %v2260_v35, %v1956_v7  ;;  %v941_v44 = vpop.f32.mrb[25].mxu0 }
 0x2a9   :  { %v3081_v47 = vadd.f32 %v1956_v7, %v941_v44 }
 0x2ab   :  { %v2263_v49 = vpop.f32.mrb[26].mxu0 }
 0x2ac   :  { %v3083_v38 = vadd.f32 %v2263_v49, %v1956_v7  ;;  %v951_v43 = vpop.f32.mrb[27].mxu0 }
 0x2ad   :  { %v952_v53 = vadd.f32 %v1956_v7, %v951_v43 }
 0x2af   :  { %v2266_v54 = vpop.f32.mrb[28].mxu0 }
 0x2b0   :  { %v3085_v59 = vadd.f32 %v2266_v54, %v1956_v7  ;;  %v961_v63 = vpop.f32.mrb[29].mxu0 }
 0x2b1   :  { %v962_v3 = vadd.f32 %v1956_v7, %v961_v63 }
 0x2b3   :  { %v2269_v50 = vpop.f32.mrb[30].mxu0 }
 0x2b4   :  { %v977_v8 = vadd.f32 %v2269_v50, %v1956_v7  ;;  %v971_v37 = vpop.f32.mrb[31].mxu0 }
 0x2b5   :  { %v972_v29 = vadd.f32 %v1956_v7, %v971_v37 }
 0x2b7   :  { %v2272_v39 = vpop.f32.mrb[32].mxu0 }
 0x2b8   :  { %v987_v33 = vadd.f32 %v2272_v39, %v1956_v7 }
 0x31e   :  { %v791_v11 = vpop.xlane.xlu0 %790 }
 0x31f   :  { %v796_v14 = vmul.f32 0.03125, %v791_v11 }
 0x321   :  { %v3032_v15 = vsub.f32 %v602_v34, %v796_v14  ;;  %v981_v34 = vpop.f32.mrb[33].mxu0 }
 0x322   :  { %v982_v51 = vadd.f32 %v1956_v7, %v981_v34 }
 0x323   :  { %v800_v16 = vmul.f32 %v3032_v15, %v3032_v15 }
 0x325   :  { %v802_v17 = vsel %vm74_vm0, %v800_v16, 0.0 }
 0x326   :  { %803 = vadd.xlane.f32.xlu1 %v802_v17 }
 0x32e   :  { %v794_v18 = vpop.xlane.xlu1 %793 }
 0x32f   :  { %v797_v19 = vmul.f32 0.03125, %v794_v18 }
 0x331   :  { %v3037_v20 = vsub.f32 %v783_v42, %v797_v19  ;;  %v912_v19 = vadd.f32 %v1956_v7, %v911_v12 }
 0x333   :  { %v801_v21 = vmul.f32 %v3037_v20, %v3037_v20 }
 0x335   :  { %v805_v22 = vsel %vm74_vm0, %v801_v21, 0.0 }
 0x336   :  { %806 = vadd.xlane.f32.xlu1 %v805_v22  ;;  %v1976_v22 = vld [vmem:[%s3426_s12] ss:$0 sm:$0xff] }
 0x3b3   :  { %v804_v32 = vpop.xlane.xlu1 %803 }
 0x3b4   :  { %v808_v42 = vmul.f32 0.03125, %v804_v32 }
 0x3b6   :  { %v810_v52 = vadd.f32 1e-05, %v808_v42 }
 0x3b8   :  { %2457 = vrsqrt.f32 %v810_v52 }
 0x3c2   :  { %v2458_v48 = vpop.eup %2457 }
 0x3c3   :  { %v807_v30 = vpop.xlane.xlu1 %806  ;;  %v814_v55 = vmul.f32 %v2458_v48, %v3032_v15  ;;  %v1973_v15 = vld [vmem:[%s3424_s10] ss:$0 sm:$0xff]  ;;  %s2568_s10 = smov [#allocation2]  }
 0x3c4   :  { %v809_v45 = vmul.f32 0.03125, %v807_v30  ;;  %s1905_s12 = sshll.u32 %s2568_s10, 4  ;;  %s1906_s12 = int_to_ptr.vmem [resolvable:$true] %s1905_s12 }
 0x3c5   :  { %v823_v6 = vmul.f32 %v1954_v5, %v814_v55  ;;  %s2541_s7 = scalar_lea.vmem %s1906_s12, 256  ;;  %p2546_p1 = scmp.lt.s32.totalorder %s1906_s12, %s1906_s12 }
 0x3c6   :  { %v811_v11 = vadd.f32 1e-05, %v809_v45  ;;  %p2542_p0 = scmp.ne.s32.totalorder %s1906_s12, %s2541_s7  ;;  %p2547_p2 = scmp.lt.s32.totalorder %s2541_s7, %s2541_s7 }
 0x3c7   :  { %v832_v14 = vadd.f32 %v1955_v57, %v823_v6 }
 0x3c8   :  { %2459 = vrsqrt.f32 %v811_v11  ;;  %p2548_p3 = por %p2547_p2, %p2546_p1 }
 0x3c9   :  { %2281 = vmatprep.mubr.msk.f32.mxu0 %vm74_vm0, %v832_v14  ;;  %2292 = vmatprep.mubr.msk.f32.mxu1 %vm74_vm0, %v832_v14 }
 0x3ca   :  { %p2549_p4 = pnand %p2548_p3, %p2542_p0 }
 0x3d2   :  { %v2460_v16 = vpop.eup %2459 }
 0x3d3   :  { %v815_v17 = vmul.f32 %v2460_v16, %v3037_v20 }
 0x3d5   :  { %v824_v18 = vmul.f32 %v1954_v5, %v815_v17 }
 0x3d7   :  { %v833_v21 = vadd.f32 %v1955_v57, %v824_v18 }
 0x3d9   :  { %2282 = vmatmul.mubr.msk.f32.vlgmr.msra.gmra.mrb[34].mxu0 %vm74_vm0, %v833_v21  ;;  %2293 = vmatmul.mubr.msk.f32.vlgmr.msra.gmra.mrb[18].mxu1 %vm74_vm0, %v833_v21 }
 0x3da   :  { %2297 = vmatprep.mubr.msk.f32.mxu1 %vm74_vm0, %v912_v19 }
 0x4ac   :  { %v2283_v23 = vpop.f32.mrb[34].mxu0  ;;  %v2294_v24 = vpop.f32.mrb[18].mxu1 }
 0x4ad   :  { %v1073_v20 = vpop.f32.mrb[35].mxu0  ;;  %v1159_v25 = vpop.f32.mrb[19].mxu1  ;;  %v1079_v61 = vadd.f32 %v2283_v23, %v1973_v15  ;;  %v1165_v60 = vadd.f32 %v2294_v24, %v1976_v22 }
 0x4ae   :  { %v1074_v26 = vadd.f32 %v1973_v15, %v1073_v20  ;;  %v1160_v27 = vadd.f32 %v1976_v22, %v1159_v25 }
 0x4b0   :  { %2295 = vmatprep.subr.msk.mxu1 %vm74_vm0, %v1074_v26  ;;  %2323 = vmatprep.subr.mxu0 %v1160_v27 }
 0x4b1   :  { %2296 = vmatpush3.xpose.msk.msra.mxu1 %vm74_vm0, %v1074_v26  ;;  %2324 = vmatpush3.msra.mxu0 %v1160_v27 }
 0x4b2   :  { %2309 = vmatprep.subr.msk.mxu1 %vm74_vm0, %v1079_v61 }
 0x4b4   :  { %2298 = vmatmul.mubr.msk.f32.vlgmr.msra.gmra.mrb[20].mxu1 %vm74_vm0, %v3069_v10 }
 0x4b5   :  { %2300 = vmatprep.mubr.msk.f32.mxu1 %vm74_vm0, %v3073_v58  ;;  %2310 = vmatpush3.xpose.msk.msra.mxu1 %vm74_vm0, %v1079_v61 }
 0x4b6   :  { %2337 = vmatprep.subr.mxu1 %v1165_v60 }
 0x4b8   :  { %2301 = vmatmul.mubr.msk.f32.gmra.mrb[22].mxu1 %vm74_vm0, %v3071_v62 }
 0x4b9   :  { %2303 = vmatprep.mubr.msk.f32.mxu1 %vm74_vm0, %v3077_v36 }
 0x4bc   :  { %2304 = vmatmul.mubr.msk.f32.gmra.mrb[24].mxu1 %vm74_vm0, %v3075_v41 }
 0x4bd   :  { %2306 = vmatprep.mubr.msk.f32.mxu1 %vm74_vm0, %v3081_v47 }
 0x4c0   :  { %2307 = vmatmul.mubr.msk.f32.gmra.mrb[26].mxu1 %vm74_vm0, %v3079_v40 }
 0x4c1   :  { %2311 = vmatprep.mubr.msk.f32.mxu1 %vm74_vm0, %v952_v53 }
 0x4c4   :  { %2312 = vmatmul.mubr.msk.f32.vlgmr.msra.gmra.mrb[28].mxu1 %vm74_vm0, %v3083_v38 }
 0x4c5   :  { %2338 = vmatpush3.msra.mxu1 %v1165_v60  ;;  %2314 = vmatprep.mubr.msk.f32.mxu1 %vm74_vm0, %v962_v3 }
 0x4c8   :  { %2315 = vmatmul.mubr.msk.f32.gmra.mrb[30].mxu1 %vm74_vm0, %v3085_v59 }
 0x4c9   :  { %2317 = vmatprep.mubr.msk.f32.mxu1 %vm74_vm0, %v972_v29 }
 0x4cc   :  { %2318 = vmatmul.mubr.msk.f32.gmra.mrb[32].mxu1 %vm74_vm0, %v977_v8 }
 0x4cd   :  { %2320 = vmatprep.mubr.msk.f32.mxu1 %vm74_vm0, %v982_v51 }
 0x4d0   :  { %2321 = vmatmul.mubr.msk.f32.gmra.mrb[34].mxu1 %vm74_vm0, %v987_v33 }
 0x587   :  { %v2299_v0 = vpop.f32.mrb[20].mxu1 }
 0x588   :  { %v1261_v1 = vpop.f32.mrb[21].mxu1  ;;  %v1435_v2 = vsel %vm424_vm1, %v2299_v0, -inf }
 0x589   :  { %1436 = vmax.xlane.f32.xlu0 %v1435_v2  ;;  %v1432_v7 = vsel %vm424_vm1, %v1261_v1, -inf }
 0x58b   :  { %v2302_v56 = vpop.f32.mrb[22].mxu1 }
 0x58c   :  { %v1271_v4 = vpop.f32.mrb[23].mxu1  ;;  %v1441_v12 = vsel %vm424_vm1, %v2302_v56, -inf }
 0x58d   :  { %1433 = vmax.xlane.f32.xlu0 %v1432_v7  ;;  %v1438_v28 = vsel %vm424_vm1, %v1271_v4, -inf }
 0x58f   :  { %v3136_v9 = vpop.f32.mrb[24].mxu1 }
 0x590   :  { %v3138_v10 = vpop.f32.mrb[25].mxu1  ;;  %v1447_v41 = vsel %vm424_vm1, %v3136_v9, -inf }
 0x591   :  { %1442 = vmax.xlane.f32.xlu0 %v1441_v12  ;;  %v1444_v40 = vsel %vm424_vm1, %v3138_v10, -inf }
 0x593   :  { %v3141_v13 = vpop.f32.mrb[26].mxu1 }
 0x594   :  { %v3143_v62 = vpop.f32.mrb[27].mxu1  ;;  %v1453_v59 = vsel %vm424_vm1, %v3141_v13, -inf }
 0x595   :  { %1439 = vmax.xlane.f32.xlu0 %v1438_v28  ;;  %v1450_v38 = vsel %vm424_vm1, %v3143_v62, -inf }
 0x597   :  { %v2313_v58 = vpop.f32.mrb[28].mxu1 }
 0x598   :  { %v3146_v31 = vpop.f32.mrb[29].mxu1  ;;  %v1459_v46 = vsel %vm424_vm1, %v2313_v58, -inf }
 0x599   :  { %1448 = vmax.xlane.f32.xlu0 %v1447_v41  ;;  %1460 = vmax.xlane.f32.xlu1 %v1459_v46  ;;  %v1456_v44 = vsel %vm424_vm1, %v3146_v31, -inf }
 0x59b   :  { %v3151_v36 = vpop.f32.mrb[30].mxu1 }
 0x59c   :  { %v3153_v35 = vpop.f32.mrb[31].mxu1  ;;  %v1465_v43 = vsel %vm424_vm1, %v3151_v36, -inf }
 0x59d   :  { %1445 = vmax.xlane.f32.xlu0 %v1444_v40  ;;  %1457 = vmax.xlane.f32.xlu1 %v1456_v44  ;;  %v1462_v63 = vsel %vm424_vm1, %v3153_v35, -inf }
 0x59f   :  { %v3159_v47 = vpop.f32.mrb[32].mxu1 }
 0x5a0   :  { %v3161_v49 = vpop.f32.mrb[33].mxu1  ;;  %v1471_v3 = vsel %vm424_vm1, %v3159_v47, -inf }
 0x5a1   :  { %1451 = vmax.xlane.f32.xlu0 %v1450_v38  ;;  %1466 = vmax.xlane.f32.xlu1 %v1465_v43  ;;  %v1468_v50 = vsel %vm424_vm1, %v3161_v49, -inf }
 0x5a3   :  { %v3167_v53 = vpop.f32.mrb[34].mxu1 }
 0x5a4   :  { %v3169_v54 = vpop.f32.mrb[35].mxu1  ;;  %v1477_v37 = vsel %vm424_vm1, %v3167_v53, -inf }
 0x5a5   :  { %1454 = vmax.xlane.f32.xlu0 %v1453_v59  ;;  %1463 = vmax.xlane.f32.xlu1 %v1462_v63  ;;  %v1474_v8 = vsel %vm424_vm1, %v3169_v54, -inf }
 0x5a9   :  { %1472 = vmax.xlane.f32.xlu1 %v1471_v3 }
 0x5ad   :  { %1469 = vmax.xlane.f32.xlu1 %v1468_v50 }
 0x5b1   :  { %1475 = vmax.xlane.f32.xlu1 %v1474_v8 }
 0x5b5   :  { %1478 = vmax.xlane.f32.xlu1 %v1477_v37 }
 0x616   :  { %v1437_v29 = vpop.xlane.xlu0 %1436 }
 0x617   :  { %v1481_v39 = vsub.f32 %v2299_v0, %v1437_v29 }
 0x619   :  { %v1498_v33 = vmul.f32 1.442695, %v1481_v39 }
 0x61a   :  { %v1434_v34 = vpop.xlane.xlu0 %1433 }
 0x61b   :  { %2461 = vpow2.f32 %v1498_v33  ;;  %v1480_v51 = vsub.f32 %v1261_v1, %v1434_v34 }
 0x61d   :  { %v1496_v32 = vmul.f32 1.442695, %v1480_v51 }
 0x61e   :  { %v1443_v42 = vpop.xlane.xlu0 %1442 }
 0x61f   :  { %2463 = vpow2.f32 %v1496_v32  ;;  %v1483_v52 = vsub.f32 %v2302_v56, %v1443_v42 }
 0x621   :  { %v1502_v48 = vmul.f32 1.442695, %v1483_v52 }
 0x622   :  { %v1440_v5 = vpop.xlane.xlu0 %1439 }
 0x623   :  { %2465 = vpow2.f32 %v1502_v48  ;;  %v1482_v30 = vsub.f32 %v1271_v4, %v1440_v5 }
 0x625   :  { %v3183_v55 = vpop.eup %2461  ;;  %v1500_v45 = vmul.f32 1.442695, %v1482_v30 }
 0x626   :  { %v1449_v57 = vpop.xlane.xlu0 %1448  ;;  %v1461_v6 = vpop.xlane.xlu1 %1460  ;;  %v1531_v11 = vsel %vm424_vm1, %v3183_v55, 0.0 }
 0x627   :  { %2467 = vpow2.f32 %v1500_v45  ;;  %v1485_v14 = vsub.f32 %v3136_v9, %v1449_v57  ;;  %v1489_v16 = vsub.f32 %v2313_v58, %v1461_v6  ;;  %1532 = vadd.xlane.f32.xlu0 %v1531_v11 }
 0x629   :  { %v3188_v17 = vpop.eup %2463  ;;  %v1506_v18 = vmul.f32 1.442695, %v1485_v14  ;;  %v1514_v19 = vmul.f32 1.442695, %v1489_v16 }
 0x62a   :  { %v1446_v21 = vpop.xlane.xlu0 %1445  ;;  %v1458_v15 = vpop.xlane.xlu1 %1457  ;;  %v1528_v22 = vsel %vm424_vm1, %v3188_v17, 0.0 }
 0x62b   :  { %2469 = vpow2.f32 %v1506_v18  ;;  %v1484_v23 = vsub.f32 %v3138_v10, %v1446_v21  ;;  %v1488_v24 = vsub.f32 %v3146_v31, %v1458_v15  ;;  %1529 = vadd.xlane.f32.xlu0 %v1528_v22 }
 0x62c   :  { %2471 = vpow2.f32 %v1514_v19 }
 0x62d   :  { %v3194_v20 = vpop.eup %2465  ;;  %v1504_v25 = vmul.f32 1.442695, %v1484_v23  ;;  %v1512_v26 = vmul.f32 1.442695, %v1488_v24 }
 0x62e   :  { %v1452_v27 = vpop.xlane.xlu0 %1451  ;;  %v1467_v61 = vpop.xlane.xlu1 %1466  ;;  %v1537_v60 = vsel %vm424_vm1, %v3194_v20, 0.0 }
 0x62f   :  { %2473 = vpow2.f32 %v1504_v25  ;;  %v1486_v0 = vsub.f32 %v3143_v62, %v1452_v27  ;;  %v1491_v1 = vsub.f32 %v3151_v36, %v1467_v61  ;;  %1538 = vadd.xlane.f32.xlu0 %v1537_v60 }
 0x630   :  { %2475 = vpow2.f32 %v1512_v26 }
 0x631   :  { %v3200_v2 = vpop.eup %2467  ;;  %v1508_v56 = vmul.f32 1.442695, %v1486_v0  ;;  %v1518_v4 = vmul.f32 1.442695, %v1491_v1 }
 0x632   :  { %v1455_v7 = vpop.xlane.xlu0 %1454  ;;  %v1464_v9 = vpop.xlane.xlu1 %1463  ;;  %v1534_v10 = vsel %vm424_vm1, %v3200_v2, 0.0 }
 0x633   :  { %2477 = vpow2.f32 %v1508_v56  ;;  %v1487_v12 = vsub.f32 %v3141_v13, %v1455_v7  ;;  %v1490_v28 = vsub.f32 %v3153_v35, %v1464_v9  ;;  %1535 = vadd.xlane.f32.xlu0 %v1534_v10 }
 0x634   :  { %2479 = vpow2.f32 %v1518_v4 }
 0x635   :  { %v3206_v62 = vpop.eup %2469  ;;  %v1510_v58 = vmul.f32 1.442695, %v1487_v12  ;;  %v1516_v31 = vmul.f32 1.442695, %v1490_v28 }
 0x636   :  { %v3208_v41 = vpop.eup %2471  ;;  %v1473_v46 = vpop.xlane.xlu1 %1472  ;;  %v1543_v36 = vsel %vm424_vm1, %v3206_v62, 0.0 }
 0x637   :  { %2481 = vpow2.f32 %v1510_v58  ;;  %v1493_v40 = vsub.f32 %v3159_v47, %v1473_v46  ;;  %1544 = vadd.xlane.f32.xlu0 %v1543_v36  ;;  %v1555_v13 = vsel %vm424_vm1, %v3208_v41, 0.0 }
 0x638   :  { %2483 = vpow2.f32 %v1516_v31  ;;  %1556 = vadd.xlane.f32.xlu1 %v1555_v13 }
 0x639   :  { %v3215_v35 = vpop.eup %2473  ;;  %v1522_v44 = vmul.f32 1.442695, %v1493_v40 }
 0x63a   :  { %v3217_v38 = vpop.eup %2475  ;;  %v1470_v43 = vpop.xlane.xlu1 %1469  ;;  %v1540_v59 = vsel %vm424_vm1, %v3215_v35, 0.0 }
 0x63b   :  { %2485 = vpow2.f32 %v1522_v44  ;;  %v1492_v63 = vsub.f32 %v3161_v49, %v1470_v43  ;;  %1541 = vadd.xlane.f32.xlu0 %v1540_v59  ;;  %v1552_v47 = vsel %vm424_vm1, %v3217_v38, 0.0 }
 0x63c   :  { %1553 = vadd.xlane.f32.xlu1 %v1552_v47 }
 0x63d   :  { %v3224_v3 = vpop.eup %2477  ;;  %v1520_v50 = vmul.f32 1.442695, %v1492_v63 }
 0x63e   :  { %v3226_v8 = vpop.eup %2479  ;;  %v1476_v37 = vpop.xlane.xlu1 %1475  ;;  %v1546_v29 = vsel %vm424_vm1, %v3224_v3, 0.0 }
 0x63f   :  { %2487 = vpow2.f32 %v1520_v50  ;;  %v1494_v39 = vsub.f32 %v3169_v54, %v1476_v37  ;;  %1547 = vadd.xlane.f32.xlu0 %v1546_v29  ;;  %v1561_v49 = vsel %vm424_vm1, %v3226_v8, 0.0 }
 0x640   :  { %1562 = vadd.xlane.f32.xlu1 %v1561_v49 }
 0x641   :  { %v3233_v33 = vpop.eup %2481  ;;  %v1524_v34 = vmul.f32 1.442695, %v1494_v39 }
 0x642   :  { %v3235_v51 = vpop.eup %2483  ;;  %v1479_v32 = vpop.xlane.xlu1 %1478  ;;  %v1549_v42 = vsel %vm424_vm1, %v3233_v33, 0.0 }
 0x643   :  { %2489 = vpow2.f32 %v1524_v34  ;;  %v1495_v52 = vsub.f32 %v3167_v53, %v1479_v32  ;;  %1550 = vadd.xlane.f32.xlu0 %v1549_v42  ;;  %v1558_v54 = vsel %vm424_vm1, %v3235_v51, 0.0 }
 0x644   :  { %1559 = vadd.xlane.f32.xlu1 %v1558_v54 }
 0x645   :  { %v3242_v48 = vpop.eup %2485  ;;  %v1526_v5 = vmul.f32 1.442695, %v1495_v52 }
 0x646   :  { %v1567_v30 = vsel %vm424_vm1, %v3242_v48, 0.0 }
 0x647   :  { %2491 = vpow2.f32 %v1526_v5 }
 0x648   :  { %1568 = vadd.xlane.f32.xlu1 %v1567_v30 }
 0x649   :  { %v3246_v45 = vpop.eup %2487 }
 0x64a   :  { %v1564_v57 = vsel %vm424_vm1, %v3246_v45, 0.0 }
 0x64c   :  { %1565 = vadd.xlane.f32.xlu1 %v1564_v57 }
 0x64d   :  { %v3250_v53 = vpop.eup %2489 }
 0x64e   :  { %v1570_v6 = vsel %vm424_vm1, %v3250_v53, 0.0 }
 0x650   :  { %1571 = vadd.xlane.f32.xlu1 %v1570_v6 }
 0x651   :  { %v3254_v11 = vpop.eup %2491 }
 0x652   :  { %v1573_v14 = vsel %vm424_vm1, %v3254_v11, 0.0 }
 0x654   :  { %1574 = vadd.xlane.f32.xlu1 %v1573_v14 }
 0x6b4   :  { %v1533_v16 = vpop.xlane.xlu0 %1532 }
 0x6b5   :  { %2493 = vrcp.f32 %v1533_v16 }
 0x6b8   :  { %v1530_v18 = vpop.xlane.xlu0 %1529 }
 0x6b9   :  { %2495 = vrcp.f32 %v1530_v18 }
 0x6bc   :  { %v1539_v19 = vpop.xlane.xlu0 %1538 }
 0x6bd   :  { %2497 = vrcp.f32 %v1539_v19 }
 0x6bf   :  { %v2494_v15 = vpop.eup %2493 }
 0x6c0   :  { %v1536_v21 = vpop.xlane.xlu0 %1535  ;;  %v1579_v25 = vmul.f32 %v2494_v15, %v3183_v55 }
 0x6c1   :  { %2499 = vrcp.f32 %v1536_v21 }
 0x6c3   :  { %v2496_v22 = vpop.eup %2495 }
 0x6c4   :  { %v1545_v23 = vpop.xlane.xlu0 %1544  ;;  %v1577_v24 = vmul.f32 %v2496_v22, %v3188_v17 }
 0x6c5   :  { %v1557_v26 = vpop.xlane.xlu1 %1556  ;;  %2501 = vrcp.f32 %v1545_v23 }
 0x6c6   :  { %2325 = vmatprep.mubr.msk.f32.mxu0 %vm424_vm1, %v1577_v24  ;;  %2503 = vrcp.f32 %v1557_v26 }
 0x6c7   :  { %2326 = vmatmul.mubr.msk.f32.vlgmr.msra.gmra.mrb[36].mxu0 %vm424_vm1, %v1579_v25  ;;  %v2498_v60 = vpop.eup %2497 }
 0x6c8   :  { %v1542_v27 = vpop.xlane.xlu0 %1541  ;;  %v1583_v55 = vmul.f32 %v2498_v60, %v3194_v20 }
 0x6c9   :  { %2505 = vrcp.f32 %v1542_v27  ;;  %v1554_v61 = vpop.xlane.xlu1 %1553 }
 0x6ca   :  { %2507 = vrcp.f32 %v1554_v61 }
 0x6cb   :  { %v2500_v0 = vpop.eup %2499 }
 0x6cc   :  { %v1548_v1 = vpop.xlane.xlu0 %1547  ;;  %v1581_v56 = vmul.f32 %v2500_v0, %v3200_v2 }
 0x6cd   :  { %2509 = vrcp.f32 %v1548_v1  ;;  %v1563_v17 = vpop.xlane.xlu1 %1562 }
 0x6ce   :  { %2328 = vmatprep.mubr.msk.f32.mxu0 %vm424_vm1, %v1581_v56  ;;  %2511 = vrcp.f32 %v1563_v17 }
 0x6cf   :  { %2329 = vmatmul.mubr.msk.f32.gmra.mrb[38].mxu0 %vm424_vm1, %v1583_v55  ;;  %v2502_v7 = vpop.eup %2501 }
 0x6d0   :  { %v1551_v4 = vpop.xlane.xlu0 %1550  ;;  %v2504_v10 = vpop.eup %2503  ;;  %v1587_v20 = vmul.f32 %v2502_v7, %v3206_v62 }
 0x6d1   :  { %2513 = vrcp.f32 %v1551_v4  ;;  %v1560_v9 = vpop.xlane.xlu1 %1559  ;;  %v1595_v46 = vmul.f32 %v2504_v10, %v3208_v41 }
 0x6d2   :  { %2515 = vrcp.f32 %v1560_v9 }
 0x6d3   :  { %v2506_v12 = vpop.eup %2505 }
 0x6d4   :  { %v2508_v28 = vpop.eup %2507  ;;  %v1585_v58 = vmul.f32 %v2506_v12, %v3215_v35 }
 0x6d5   :  { %v1569_v2 = vpop.xlane.xlu1 %1568  ;;  %v1593_v31 = vmul.f32 %v2508_v28, %v3217_v38 }
 0x6d6   :  { %2331 = vmatprep.mubr.msk.f32.mxu0 %vm424_vm1, %v1585_v58  ;;  %2517 = vrcp.f32 %v1569_v2 }
 0x6d7   :  { %v2510_v36 = vpop.eup %2509  ;;  %2339 = vmatprep.mubr.msk.f32.mxu1 %vm424_vm1, %v1593_v31  ;;  %2332 = vmatmul.mubr.msk.f32.gmra.mrb[40].mxu0 %vm424_vm1, %v1587_v20 }
 0x6d8   :  { %2340 = vmatmul.mubr.msk.f32.vlgmr.msra.gmra.mrb[36].mxu1 %vm424_vm1, %v1595_v46  ;;  %v1589_v40 = vmul.f32 %v2510_v36, %v3224_v3  ;;  %v2512_v35 = vpop.eup %2511 }
 0x6d9   :  { %v1566_v13 = vpop.xlane.xlu1 %1565  ;;  %v1599_v59 = vmul.f32 %v2512_v35, %v3226_v8 }
 0x6da   :  { %2519 = vrcp.f32 %v1566_v13  ;;  %2334 = vmatprep.mubr.msk.f32.mxu0 %vm424_vm1, %v1589_v40 }
 0x6db   :  { %v2514_v62 = vpop.eup %2513 }
 0x6dc   :  { %v2516_v44 = vpop.eup %2515  ;;  %v1591_v41 = vmul.f32 %v2514_v62, %v3233_v33 }
 0x6dd   :  { %v1572_v38 = vpop.xlane.xlu1 %1571  ;;  %v1597_v43 = vmul.f32 %v2516_v44, %v3235_v51 }
 0x6de   :  { %2521 = vrcp.f32 %v1572_v38  ;;  %2335 = vmatmul.mubr.msk.f32.gmra.mrb[42].mxu0 %vm424_vm1, %v1591_v41 }
 0x6df   :  { %2342 = vmatprep.mubr.msk.f32.mxu1 %vm424_vm1, %v1597_v43 }
 0x6e0   :  { %2343 = vmatmul.mubr.msk.f32.gmra.mrb[38].mxu1 %vm424_vm1, %v1599_v59  ;;  %v2518_v47 = vpop.eup %2517 }
 0x6e1   :  { %v1575_v63 = vpop.xlane.xlu1 %1574  ;;  %v1603_v37 = vmul.f32 %v2518_v47, %v3242_v48 }
 0x6e2   :  { %2523 = vrcp.f32 %v1575_v63 }
 0x6e4   :  { %v2520_v3 = vpop.eup %2519 }
 0x6e5   :  { %v1601_v50 = vmul.f32 %v2520_v3, %v3246_v45 }
 0x6e7   :  { %2345 = vmatprep.mubr.msk.f32.mxu1 %vm424_vm1, %v1601_v50 }
 0x6e8   :  { %v2522_v29 = vpop.eup %2521  ;;  %2346 = vmatmul.mubr.msk.f32.gmra.mrb[40].mxu1 %vm424_vm1, %v1603_v37 }
 0x6e9   :  { %v1605_v39 = vmul.f32 %v2522_v29, %v3250_v53 }
 0x6eb   :  { %2348 = vmatprep.mubr.msk.f32.mxu1 %vm424_vm1, %v1605_v39 }
 0x6ec   :  { %v2524_v8 = vpop.eup %2523 }
 0x6ed   :  { %v1607_v49 = vmul.f32 %v2524_v8, %v3254_v11 }
 0x6ef   :  { %2349 = vmatmul.mubr.msk.f32.gmra.mrb[42].mxu1 %vm424_vm1, %v1607_v49 }
 0x6f0   :  { %2552 = shalt.err (!%p2549_p4)
}
 0x6f1   :  { %s2553_s19 = scalar_lea.hbm %s3428_s14, 256 }
 0x6f2   :  { %p2554_p5 = scmp.ne.s32.totalorder %s3428_s14, %s2553_s19  ;;  %p2557_p6 = scmp.lt.u32.totalorder %s2553_s19, %s3428_s14 }
 0x6f4   :  { %p2559_p7 = pnand %p2557_p6, %p2554_p5 }
 0x6f6   :  { %2562 = shalt.err (!%p2559_p7)
}
 0x6f7   :  { %s2569_s24 = smov 128   ;;  %s2570_s1 = smov 8   ;;  %v2525_v34 = vld [vmem:[%s3414_s0 + $0x8] sm:$0xff]  ;;  %v2526_v42 = vld [vmem:[%s3414_s0] sm:$0xff]  ;;  %v2527_v48 = vld [vmem:[%s3414_s0 + $0x18] sm:$0xff] }
 0x6f8   :  { %1911 = dma.vmem_to_hbm [thread:$0]  %s1906_s12, 256, %s3428_s14, [#allocation3], %s2569_s24, %s2569_s24, %s2570_s1  }
 0x6f9   :  { %v2528_v45 = vld [vmem:[%s3414_s0 + $0x10] sm:$0xff]  ;;  %v2529_v6 = vld [vmem:[%s3414_s0 + $0x28] sm:$0xff]  ;;  %v2531_v21 = vld [vmem:[%s3414_s0 + $0x20] sm:$0xff] }
 0x6fa   :  { %v2530_v18 = vld [vmem:[%s3414_s0 + $0x48] sm:$0xff]  ;;  %v2532_v23 = vld [vmem:[%s3414_s0 + $0x40] sm:$0xff]  ;;  %v2533_v26 = vld [vmem:[%s3414_s0 + $0x38] sm:$0xff] }
 0x6fb   :  { %v2534_v60 = vld [vmem:[%s3414_s0 + $0x30] sm:$0xff]  ;;  %v2535_v56 = vld [vmem:[%s3414_s0 + $0x58] sm:$0xff]  ;;  %v2537_v10 = vld [vmem:[%s3414_s0 + $0x68] sm:$0xff] }
 0x6fc   :  { %v2536_v4 = vld [vmem:[%s3414_s0 + $0x50] sm:$0xff]  ;;  %v2538_v58 = vld [vmem:[%s3414_s0 + $0x60] sm:$0xff]  ;;  %v2539_v20 = vld [vmem:[%s3414_s0 + $0x78] sm:$0xff] }
 0x6fd   :  { %v2540_v40 = vld [vmem:[%s3414_s0 + $0x70] sm:$0xff] }
 0x79a   :  { %v2327_v33 = vpop.f32.mrb[36].mxu0 }
 0x79b   :  { %v1867_v51 = vadd.f32 %v2525_v34, %v2327_v33  ;;  %v1698_v32 = vpop.f32.mrb[37].mxu0 }
 0x79c   :  { %v1866_v52 = vadd.f32 %v2526_v42, %v1698_v32 }
 0x79d   :  { %1883 = vst.msk [vmem:[%s3427_s13 + $0x8] sm:$0xff] %vm74_vm0, %v1867_v51 }
 0x79e   :  { %1882 = vst.msk [vmem:[%s3427_s13] sm:$0xff] %vm74_vm0, %v1866_v52 }
 0x7a2   :  { %v2330_v54 = vpop.f32.mrb[38].mxu0 }
 0x7a3   :  { %v1869_v5 = vadd.f32 %v2527_v48, %v2330_v54  ;;  %v1708_v30 = vpop.f32.mrb[39].mxu0 }
 0x7a4   :  { %v1868_v57 = vadd.f32 %v2528_v45, %v1708_v30 }
 0x7a5   :  { %1885 = vst.msk [vmem:[%s3427_s13 + $0x18] sm:$0xff] %vm74_vm0, %v1869_v5 }
 0x7a6   :  { %1884 = vst.msk [vmem:[%s3427_s13 + $0x10] sm:$0xff] %vm74_vm0, %v1868_v57 }
 0x7aa   :  { %v2333_v53 = vpop.f32.mrb[40].mxu0 }
 0x7ab   :  { %v1871_v11 = vadd.f32 %v2529_v6, %v2333_v53  ;;  %v2341_v14 = vpop.f32.mrb[36].mxu1  ;;  %v1718_v16 = vpop.f32.mrb[41].mxu0 }
 0x7ac   :  { %v1875_v19 = vadd.f32 %v2530_v18, %v2341_v14  ;;  %v1870_v15 = vadd.f32 %v2531_v21, %v1718_v16  ;;  %v1827_v22 = vpop.f32.mrb[37].mxu1 }
 0x7ad   :  { %1887 = vst.msk [vmem:[%s3427_s13 + $0x28] sm:$0xff] %vm74_vm0, %v1871_v11  ;;  %v1874_v24 = vadd.f32 %v2532_v23, %v1827_v22 }
 0x7ae   :  { %1891 = vst.msk [vmem:[%s3427_s13 + $0x48] sm:$0xff] %vm74_vm0, %v1875_v19  ;;  %1886 = vst.msk [vmem:[%s3427_s13 + $0x20] sm:$0xff] %vm74_vm0, %v1870_v15 }
 0x7af   :  { %1890 = vst.msk [vmem:[%s3427_s13 + $0x40] sm:$0xff] %vm74_vm0, %v1874_v24 }
 0x7b1   :  { %v2336_v25 = vpop.f32.mrb[42].mxu0 }
 0x7b2   :  { %v1873_v27 = vadd.f32 %v2533_v26, %v2336_v25  ;;  %v1728_v61 = vpop.f32.mrb[43].mxu0 }
 0x7b3   :  { %v1872_v0 = vadd.f32 %v2534_v60, %v1728_v61  ;;  %v2344_v1 = vpop.f32.mrb[38].mxu1 }
 0x7b4   :  { %1889 = vst.msk [vmem:[%s3427_s13 + $0x38] sm:$0xff] %vm74_vm0, %v1873_v27  ;;  %v1877_v17 = vadd.f32 %v2535_v56, %v2344_v1  ;;  %v1837_v55 = vpop.f32.mrb[39].mxu1 }
 0x7b5   :  { %1888 = vst.msk [vmem:[%s3427_s13 + $0x30] sm:$0xff] %vm74_vm0, %v1872_v0  ;;  %v1876_v7 = vadd.f32 %v2536_v4, %v1837_v55 }
 0x7b6   :  { %1893 = vst.msk [vmem:[%s3427_s13 + $0x58] sm:$0xff] %vm74_vm0, %v1877_v17 }
 0x7b7   :  { %1892 = vst.msk [vmem:[%s3427_s13 + $0x50] sm:$0xff] %vm74_vm0, %v1876_v7 }
 0x7bb   :  { %v2347_v9 = vpop.f32.mrb[40].mxu1 }
 0x7bc   :  { %v1879_v12 = vadd.f32 %v2537_v10, %v2347_v9  ;;  %v1847_v28 = vpop.f32.mrb[41].mxu1 }
 0x7bd   :  { %v1878_v2 = vadd.f32 %v2538_v58, %v1847_v28 }
 0x7be   :  { %1895 = vst.msk [vmem:[%s3427_s13 + $0x68] sm:$0xff] %vm74_vm0, %v1879_v12 }
 0x7bf   :  { %1894 = vst.msk [vmem:[%s3427_s13 + $0x60] sm:$0xff] %vm74_vm0, %v1878_v2 }
 0x7c2   :  { %v2350_v31 = vpop.f32.mrb[42].mxu1 }
 0x7c3   :  { %v1881_v46 = vadd.f32 %v2539_v20, %v2350_v31  ;;  %v1857_v36 = vpop.f32.mrb[43].mxu1 }
 0x7c4   :  { %v1880_v13 = vadd.f32 %v2540_v40, %v1857_v36 }
 0x7c5   :  { %1897 = vst.msk [vmem:[%s3427_s13 + $0x78] sm:$0xff] %vm74_vm0, %v1881_v46 }
 0x7c6   :  { %1896 = vst.msk [vmem:[%s3427_s13 + $0x70] sm:$0xff] %vm74_vm0, %v1880_v13 }
 0x7c7   :  { %2563 = dma.done.wait [#allocation3], 256  }
 0x7c8   :  { %2564 = vsyncadd [#allocation3], 4294967040 }
 0x7c9   :  { %1917 = vsyncpa [#allocation3], 1 }

</bundles_post_ra>
